<compile_context>
chip_gen: v7x
topology: tpu7x:2x2x1
jax: 0.10.0
libtpu: 0.0.40
codegen_flags: <defaults>
</compile_context>

<pallas_src>
import jax
import jax.numpy as jnp
from jax import lax
from jax.experimental import pallas as pl
from jax.experimental.pallas import tpu as pltpu

# Make the pure-JAX reference use full-f32 matmuls so the comparison is tight.
jax.config.update("jax_default_matmul_precision", "highest")


# ---------------------------------------------------------------------------
# Fused kernel: Q/K/V projections (all heads at once) + per-head (Q Kᵀ) V
#               + fused output projection, tiled over (batch, q-tile, k-tile).
# ---------------------------------------------------------------------------
def _make_mha_kernel(H, Dq, Dk):
    def kernel(q_ref, k_ref, v_ref,
               wqT_ref, bq_ref, wkT_ref, bk_ref, wvT_ref, bv_ref,
               woT_ref, bo_ref,
               o_ref,
               qproj_ref, acc_ref):
        ki = pl.program_id(2)
        nk = pl.num_programs(2)

        # New (b, q-tile): project Q for all heads once (single wide matmul,
        # N = H*Dq) and zero the concat-of-heads accumulator.
        @pl.when(ki == 0)
        def _init():
            qproj_ref[...] = (
                jnp.dot(q_ref[0], wqT_ref[...],
                        preferred_element_type=jnp.float32) + bq_ref[...])
            acc_ref[...] = jnp.zeros_like(acc_ref)

        # K/V projections for this k-tile — fused over heads (N = H*Dk).
        K = jnp.dot(k_ref[0], wkT_ref[...],
                    preferred_element_type=jnp.float32) + bk_ref[...]   # (Tk, H*Dk)
        V = jnp.dot(v_ref[0], wvT_ref[...],
                    preferred_element_type=jnp.float32) + bv_ref[...]   # (Tk, H*Dk)
        Q = qproj_ref[...]                                              # (Tq, H*Dq)

        # Per-head raw scores and scores@V (reference discards the softmax).
        # Head loop is unrolled at trace time; contractions are on the last
        # dim of both operands (no in-kernel transposes).
        contribs = []
        for h in range(H):
            Qh = Q[:, h * Dq:(h + 1) * Dq]                              # (Tq, Dq)
            Kh = K[:, h * Dk:(h + 1) * Dk]                              # (Tk, Dk)
            Vh = V[:, h * Dk:(h + 1) * Dk]                              # (Tk, Dk)
            s = lax.dot_general(Qh, Kh, (((1,), (1,)), ((), ())),
                                preferred_element_type=jnp.float32)     # (Tq, Tk)
            contribs.append(
                jnp.dot(s, Vh, preferred_element_type=jnp.float32))     # (Tq, Dk)
        acc_ref[...] += jnp.concatenate(contribs, axis=-1)              # (Tq, H*Dk)

        # Last k-tile: fused output projection (lane-dense store of a D-wide
        # block), write back once per (b, q-tile).
        @pl.when(ki == nk - 1)
        def _finalize():
            o_ref[0] = (jnp.dot(acc_ref[...], woT_ref[...],
                                preferred_element_type=jnp.float32)
                        + bo_ref[...]).astype(o_ref.dtype)

    return kernel


def _pick_tile(size, cap):
    """Largest tile <= cap that evenly divides `size`."""
    t = max(1, min(size, cap))
    while size % t:
        t -= 1
    return t


# ---------------------------------------------------------------------------
# Wrapper
# ---------------------------------------------------------------------------
def multi_head_attention(query, key, value, params, *, tq_cap=256, tk_cap=512):
    """query/key/value: (B, S, dim_in); params: dict of stacked per-head weights
    in PyTorch Linear convention (weight is (out, in))."""
    B, Sq, D = query.shape
    _, Sk, _ = key.shape
    H, Dq, _ = params["wq"].shape
    Dk = params["wk"].shape[1]
    D_out = params["wo"].shape[0]

    # One-time, wrapper-side restructuring (cheap XLA ops outside the kernel):
    # stack per-head weights into one fused projection weight and pre-transpose
    # so the kernel contracts on the stored axis.
    wqT = params["wq"].reshape(H * Dq, D).T          # (D, H*Dq)
    wkT = params["wk"].reshape(H * Dk, D).T          # (D, H*Dk)
    wvT = params["wv"].reshape(H * Dk, D).T          # (D, H*Dk)
    woT = params["wo"].T                             # (H*Dk, D_out)
    bq = params["bq"].reshape(1, H * Dq)
    bk = params["bk"].reshape(1, H * Dk)
    bv = params["bv"].reshape(1, H * Dk)
    bo = params["bo"].reshape(1, D_out)

    Tq = _pick_tile(Sq, tq_cap)
    Tk = _pick_tile(Sk, tk_cap)
    grid = (B, Sq // Tq, Sk // Tk)

    kernel = _make_mha_kernel(H, Dq, Dk)

    return pl.pallas_call(
        kernel,
        out_shape=jax.ShapeDtypeStruct((B, Sq, D_out), jnp.float32),
        grid_spec=pltpu.PrefetchScalarGridSpec(
            num_scalar_prefetch=0,
            grid=grid,
            in_specs=[
                pl.BlockSpec((1, Tq, D), lambda b, qi, ki: (b, qi, 0)),   # query tile
                pl.BlockSpec((1, Tk, D), lambda b, qi, ki: (b, ki, 0)),   # key tile
                pl.BlockSpec((1, Tk, D), lambda b, qi, ki: (b, ki, 0)),   # value tile
                pl.BlockSpec((D, H * Dq), lambda b, qi, ki: (0, 0)),      # WqT (resident)
                pl.BlockSpec((1, H * Dq), lambda b, qi, ki: (0, 0)),      # bq
                pl.BlockSpec((D, H * Dk), lambda b, qi, ki: (0, 0)),      # WkT
                pl.BlockSpec((1, H * Dk), lambda b, qi, ki: (0, 0)),      # bk
                pl.BlockSpec((D, H * Dk), lambda b, qi, ki: (0, 0)),      # WvT
                pl.BlockSpec((1, H * Dk), lambda b, qi, ki: (0, 0)),      # bv
                pl.BlockSpec((H * Dk, D_out), lambda b, qi, ki: (0, 0)),  # WoT
                pl.BlockSpec((1, D_out), lambda b, qi, ki: (0, 0)),       # bo
            ],
            out_specs=pl.BlockSpec((1, Tq, D_out), lambda b, qi, ki: (b, qi, 0)),
            scratch_shapes=[
                pltpu.VMEM((Tq, H * Dq), jnp.float32),   # fused Q projection (reused over k)
                pltpu.VMEM((Tq, H * Dk), jnp.float32),   # concat-of-heads accumulator
            ],
        ),
        compiler_params=pltpu.CompilerParams(
            dimension_semantics=("parallel", "parallel", "arbitrary"),
            vmem_limit_bytes=64 * 1024 * 1024,
        ),
    )(query, key, value, wqT, bq, wkT, bk, wvT, bv, woT, bo)


# ---------------------------------------------------------------------------
# Pure-JAX reference (mirrors the PyTorch forward, including the discarded
# softmax — i.e. raw scores @ V)
# ---------------------------------------------------------------------------
def reference(query, key, value, params):
    outs = []
    H = params["wq"].shape[0]
    for h in range(H):
        Q = query @ params["wq"][h].T + params["bq"][h]
        K = key   @ params["wk"][h].T + params["bk"][h]
        V = value @ params["wv"][h].T + params["bv"][h]
        scores = jnp.einsum("bqd,bkd->bqk", Q, K)
        outs.append(jnp.einsum("bqk,bkd->bqd", scores, V))
    concat = jnp.concatenate(outs, axis=-1)
    return concat @ params["wo"].T + params["bo"][0]


if __name__ == "__main__":
    # small shapes consistent with the module
    B, S, dim_in, dim_q, dim_k, num_heads = 2, 8, 32, 16, 16, 4

    key0 = jax.random.PRNGKey(0)
    ks = jax.random.split(key0, 12)

    # deterministic synthetic parameters (PyTorch Linear convention: W is (out, in))
    params = {
        "wq": jax.random.normal(ks[0], (num_heads, dim_q, dim_in), jnp.float32) * 0.1,
        "bq": jax.random.normal(ks[1], (num_heads, dim_q), jnp.float32) * 0.1,
        "wk": jax.random.normal(ks[2], (num_heads, dim_k, dim_in), jnp.float32) * 0.1,
        "bk": jax.random.normal(ks[3], (num_heads, dim_k), jnp.float32) * 0.1,
        "wv": jax.random.normal(ks[4], (num_heads, dim_k, dim_in), jnp.float32) * 0.1,
        "bv": jax.random.normal(ks[5], (num_heads, dim_k), jnp.float32) * 0.1,
        "wo": jax.random.normal(ks[6], (dim_in, num_heads * dim_k), jnp.float32) * 0.1,
        "bo": jax.random.normal(ks[7], (1, dim_in), jnp.float32) * 0.1,
    }

    query = jax.random.normal(ks[8],  (B, S, dim_in), jnp.float32)
    key   = jax.random.normal(ks[9],  (B, S, dim_in), jnp.float32)
    value = jax.random.normal(ks[10], (B, S, dim_in), jnp.float32)

    out = multi_head_attention(query, key, value, params)
    out = jax.block_until_ready(out)

    ref = reference(query, key, value, params)
    assert out.shape == (B, S, dim_in)
    assert jnp.allclose(out, ref, atol=1e-4, rtol=1e-4), "mismatch vs reference"

    print("KERNEL_OK")
</pallas_src>

<mosaic_0001>
module attributes {stable_mosaic.version = 11 : i64} {
  func.func @kernel(%arg0: i32, %arg1: i32, %arg2: i32, %arg3: memref<1x8x32xf32, #tpu.memory_space<vmem>>, %arg4: memref<1x8x32xf32, #tpu.memory_space<vmem>>, %arg5: memref<1x8x32xf32, #tpu.memory_space<vmem>>, %arg6: memref<32x64xf32, #tpu.memory_space<vmem>>, %arg7: memref<1x64xf32, #tpu.memory_space<vmem>>, %arg8: memref<32x64xf32, #tpu.memory_space<vmem>>, %arg9: memref<1x64xf32, #tpu.memory_space<vmem>>, %arg10: memref<32x64xf32, #tpu.memory_space<vmem>>, %arg11: memref<1x64xf32, #tpu.memory_space<vmem>>, %arg12: memref<64x32xf32, #tpu.memory_space<vmem>>, %arg13: memref<1x32xf32, #tpu.memory_space<vmem>>, %arg14: memref<1x8x32xf32, #tpu.memory_space<vmem>>, %arg15: memref<8x64xf32, #tpu.memory_space<vmem>>, %arg16: memref<8x64xf32, #tpu.memory_space<vmem>>) attributes {dimension_semantics = [#tpu.dimension_semantics<parallel>, #tpu.dimension_semantics<parallel>, #tpu.dimension_semantics<arbitrary>], iteration_bounds = array<i64: 2, 1, 1>, scalar_prefetch = 0 : i64, scratch_operands = 2 : i64, tpu.core_type = #tpu.core_type<tc>, window_params = [{transform_indices = @transform_0, window_bounds = array<i64: 1, 8, 32>}, {transform_indices = @transform_1, window_bounds = array<i64: 1, 8, 32>}, {transform_indices = @transform_2, window_bounds = array<i64: 1, 8, 32>}, {pipeline_mode = #tpu.pipeline_mode<synchronous>, transform_indices = @transform_3, window_bounds = array<i64: 32, 64>}, {pipeline_mode = #tpu.pipeline_mode<synchronous>, transform_indices = @transform_4, window_bounds = array<i64: 1, 64>}, {pipeline_mode = #tpu.pipeline_mode<synchronous>, transform_indices = @transform_5, window_bounds = array<i64: 32, 64>}, {pipeline_mode = #tpu.pipeline_mode<synchronous>, transform_indices = @transform_6, window_bounds = array<i64: 1, 64>}, {pipeline_mode = #tpu.pipeline_mode<synchronous>, transform_indices = @transform_7, window_bounds = array<i64: 32, 64>}, {pipeline_mode = #tpu.pipeline_mode<synchronous>, transform_indices = @transform_8, window_bounds = array<i64: 1, 64>}, {pipeline_mode = #tpu.pipeline_mode<synchronous>, transform_indices = @transform_9, window_bounds = array<i64: 64, 32>}, {pipeline_mode = #tpu.pipeline_mode<synchronous>, transform_indices = @transform_10, window_bounds = array<i64: 1, 32>}, {transform_indices = @transform_11, window_bounds = array<i64: 1, 8, 32>}]} {
    %c0_i32 = arith.constant 0 : i32
    %0 = arith.cmpi eq, %arg2, %c0_i32 : i32
    %1 = arith.extui %0 : i1 to i32
    %c0_i32_0 = arith.constant 0 : i32
    %2 = arith.cmpi ne, %1, %c0_i32_0 : i32
    scf.if %2 {
      %c0_31 = arith.constant 0 : index
      %c0_32 = arith.constant 0 : index
      %c0_33 = arith.constant 0 : index
      %45 = vector.load %arg3[%c0_31, %c0_32, %c0_33] : memref<1x8x32xf32, #tpu.memory_space<vmem>>, vector<1x8x32xf32>
      %46 = vector.shape_cast %45 : vector<1x8x32xf32> to vector<8x32xf32>
      %c0_34 = arith.constant 0 : index
      %c0_35 = arith.constant 0 : index
      %47 = vector.load %arg6[%c0_34, %c0_35] : memref<32x64xf32, #tpu.memory_space<vmem>>, vector<32x64xf32>
      %cst_36 = arith.constant dense<0.000000e+00> : vector<8x64xf32>
      %48 = tpu.matmul %46, %47, %cst_36 {dimension_numbers = #tpu.dot_dimension_numbers<[1], [0], [0], [1], [0, 0, 1, 1], [], []>, precision = #tpu.contract_precision<fp32>} : vector<8x32xf32>, vector<32x64xf32>, vector<8x64xf32> -> vector<8x64xf32>
      %c0_37 = arith.constant 0 : index
      %c0_38 = arith.constant 0 : index
      %49 = vector.load %arg7[%c0_37, %c0_38] : memref<1x64xf32, #tpu.memory_space<vmem>>, vector<1x64xf32>
      %50 = vector.broadcast %49 : vector<1x64xf32> to vector<8x64xf32>
      %51 = arith.addf %48, %50 : vector<8x64xf32>
      %c0_39 = arith.constant 0 : index
      %c0_40 = arith.constant 0 : index
      %52 = vector.load %arg15[%c0_39, %c0_40] : memref<8x64xf32, #tpu.memory_space<vmem>>, vector<8x64xf32>
      tpu.vector_store %arg15[%c0_39, %c0_40], %51 {strides = array<i32>} : memref<8x64xf32, #tpu.memory_space<vmem>>, vector<8x64xf32>,
      %cst_41 = arith.constant 0.000000e+00 : f32
      %53 = vector.broadcast %cst_41 : f32 to vector<8x64xf32>
      %c0_42 = arith.constant 0 : index
      %c0_43 = arith.constant 0 : index
      %54 = vector.load %arg16[%c0_42, %c0_43] : memref<8x64xf32, #tpu.memory_space<vmem>>, vector<8x64xf32>
      tpu.vector_store %arg16[%c0_42, %c0_43], %53 {strides = array<i32>} : memref<8x64xf32, #tpu.memory_space<vmem>>, vector<8x64xf32>,
    } else {
    }
    %c0 = arith.constant 0 : index
    %c0_1 = arith.constant 0 : index
    %c0_2 = arith.constant 0 : index
    %3 = vector.load %arg4[%c0, %c0_1, %c0_2] : memref<1x8x32xf32, #tpu.memory_space<vmem>>, vector<1x8x32xf32>
    %4 = vector.shape_cast %3 : vector<1x8x32xf32> to vector<8x32xf32>
    %c0_3 = arith.constant 0 : index
    %c0_4 = arith.constant 0 : index
    %5 = vector.load %arg8[%c0_3, %c0_4] : memref<32x64xf32, #tpu.memory_space<vmem>>, vector<32x64xf32>
    %cst = arith.constant dense<0.000000e+00> : vector<8x64xf32>
    %6 = tpu.matmul %4, %5, %cst {dimension_numbers = #tpu.dot_dimension_numbers<[1], [0], [0], [1], [0, 0, 1, 1], [], []>, precision = #tpu.contract_precision<fp32>} : vector<8x32xf32>, vector<32x64xf32>, vector<8x64xf32> -> vector<8x64xf32>
    %c0_5 = arith.constant 0 : index
    %c0_6 = arith.constant 0 : index
    %7 = vector.load %arg9[%c0_5, %c0_6] : memref<1x64xf32, #tpu.memory_space<vmem>>, vector<1x64xf32>
    %8 = vector.broadcast %7 : vector<1x64xf32> to vector<8x64xf32>
    %9 = arith.addf %6, %8 : vector<8x64xf32>
    %c0_7 = arith.constant 0 : index
    %c0_8 = arith.constant 0 : index
    %c0_9 = arith.constant 0 : index
    %10 = vector.load %arg5[%c0_7, %c0_8, %c0_9] : memref<1x8x32xf32, #tpu.memory_space<vmem>>, vector<1x8x32xf32>
    %11 = vector.shape_cast %10 : vector<1x8x32xf32> to vector<8x32xf32>
    %c0_10 = arith.constant 0 : index
    %c0_11 = arith.constant 0 : index
    %12 = vector.load %arg10[%c0_10, %c0_11] : memref<32x64xf32, #tpu.memory_space<vmem>>, vector<32x64xf32>
    %cst_12 = arith.constant dense<0.000000e+00> : vector<8x64xf32>
    %13 = tpu.matmul %11, %12, %cst_12 {dimension_numbers = #tpu.dot_dimension_numbers<[1], [0], [0], [1], [0, 0, 1, 1], [], []>, precision = #tpu.contract_precision<fp32>} : vector<8x32xf32>, vector<32x64xf32>, vector<8x64xf32> -> vector<8x64xf32>
    %c0_13 = arith.constant 0 : index
    %c0_14 = arith.constant 0 : index
    %14 = vector.load %arg11[%c0_13, %c0_14] : memref<1x64xf32, #tpu.memory_space<vmem>>, vector<1x64xf32>
    %15 = vector.broadcast %14 : vector<1x64xf32> to vector<8x64xf32>
    %16 = arith.addf %13, %15 : vector<8x64xf32>
    %c0_15 = arith.constant 0 : index
    %c0_16 = arith.constant 0 : index
    %17 = vector.load %arg15[%c0_15, %c0_16] : memref<8x64xf32, #tpu.memory_space<vmem>>, vector<8x64xf32>
    %18 = vector.extract_strided_slice %17 {offsets = [0, 0], sizes = [8, 16], strides = [1, 1]} : vector<8x64xf32> to vector<8x16xf32>
    %19 = vector.extract_strided_slice %9 {offsets = [0, 0], sizes = [8, 16], strides = [1, 1]} : vector<8x64xf32> to vector<8x16xf32>
    %20 = vector.extract_strided_slice %16 {offsets = [0, 0], sizes = [8, 16], strides = [1, 1]} : vector<8x64xf32> to vector<8x16xf32>
    %cst_17 = arith.constant dense<0.000000e+00> : vector<8x8xf32>
    %21 = tpu.matmul %18, %19, %cst_17 {dimension_numbers = #tpu.dot_dimension_numbers<[1], [1], [0], [0], [0, 0, 1, 0], [], []>, precision = #tpu.contract_precision<fp32>} : vector<8x16xf32>, vector<8x16xf32>, vector<8x8xf32> -> vector<8x8xf32>
    %cst_18 = arith.constant dense<0.000000e+00> : vector<8x16xf32>
    %22 = tpu.matmul %21, %20, %cst_18 {dimension_numbers = #tpu.dot_dimension_numbers<[1], [0], [0], [1], [0, 0, 1, 1], [], []>, precision = #tpu.contract_precision<fp32>} : vector<8x8xf32>, vector<8x16xf32>, vector<8x16xf32> -> vector<8x16xf32>
    %23 = vector.extract_strided_slice %17 {offsets = [0, 16], sizes = [8, 16], strides = [1, 1]} : vector<8x64xf32> to vector<8x16xf32>
    %24 = vector.extract_strided_slice %9 {offsets = [0, 16], sizes = [8, 16], strides = [1, 1]} : vector<8x64xf32> to vector<8x16xf32>
    %25 = vector.extract_strided_slice %16 {offsets = [0, 16], sizes = [8, 16], strides = [1, 1]} : vector<8x64xf32> to vector<8x16xf32>
    %cst_19 = arith.constant dense<0.000000e+00> : vector<8x8xf32>
    %26 = tpu.matmul %23, %24, %cst_19 {dimension_numbers = #tpu.dot_dimension_numbers<[1], [1], [0], [0], [0, 0, 1, 0], [], []>, precision = #tpu.contract_precision<fp32>} : vector<8x16xf32>, vector<8x16xf32>, vector<8x8xf32> -> vector<8x8xf32>
    %cst_20 = arith.constant dense<0.000000e+00> : vector<8x16xf32>
    %27 = tpu.matmul %26, %25, %cst_20 {dimension_numbers = #tpu.dot_dimension_numbers<[1], [0], [0], [1], [0, 0, 1, 1], [], []>, precision = #tpu.contract_precision<fp32>} : vector<8x8xf32>, vector<8x16xf32>, vector<8x16xf32> -> vector<8x16xf32>
    %28 = vector.extract_strided_slice %17 {offsets = [0, 32], sizes = [8, 16], strides = [1, 1]} : vector<8x64xf32> to vector<8x16xf32>
    %29 = vector.extract_strided_slice %9 {offsets = [0, 32], sizes = [8, 16], strides = [1, 1]} : vector<8x64xf32> to vector<8x16xf32>
    %30 = vector.extract_strided_slice %16 {offsets = [0, 32], sizes = [8, 16], strides = [1, 1]} : vector<8x64xf32> to vector<8x16xf32>
    %cst_21 = arith.constant dense<0.000000e+00> : vector<8x8xf32>
    %31 = tpu.matmul %28, %29, %cst_21 {dimension_numbers = #tpu.dot_dimension_numbers<[1], [1], [0], [0], [0, 0, 1, 0], [], []>, precision = #tpu.contract_precision<fp32>} : vector<8x16xf32>, vector<8x16xf32>, vector<8x8xf32> -> vector<8x8xf32>
    %cst_22 = arith.constant dense<0.000000e+00> : vector<8x16xf32>
    %32 = tpu.matmul %31, %30, %cst_22 {dimension_numbers = #tpu.dot_dimension_numbers<[1], [0], [0], [1], [0, 0, 1, 1], [], []>, precision = #tpu.contract_precision<fp32>} : vector<8x8xf32>, vector<8x16xf32>, vector<8x16xf32> -> vector<8x16xf32>
    %33 = vector.extract_strided_slice %17 {offsets = [0, 48], sizes = [8, 16], strides = [1, 1]} : vector<8x64xf32> to vector<8x16xf32>
    %34 = vector.extract_strided_slice %9 {offsets = [0, 48], sizes = [8, 16], strides = [1, 1]} : vector<8x64xf32> to vector<8x16xf32>
    %35 = vector.extract_strided_slice %16 {offsets = [0, 48], sizes = [8, 16], strides = [1, 1]} : vector<8x64xf32> to vector<8x16xf32>
    %cst_23 = arith.constant dense<0.000000e+00> : vector<8x8xf32>
    %36 = tpu.matmul %33, %34, %cst_23 {dimension_numbers = #tpu.dot_dimension_numbers<[1], [1], [0], [0], [0, 0, 1, 0], [], []>, precision = #tpu.contract_precision<fp32>} : vector<8x16xf32>, vector<8x16xf32>, vector<8x8xf32> -> vector<8x8xf32>
    %cst_24 = arith.constant dense<0.000000e+00> : vector<8x16xf32>
    %37 = tpu.matmul %36, %35, %cst_24 {dimension_numbers = #tpu.dot_dimension_numbers<[1], [0], [0], [1], [0, 0, 1, 1], [], []>, precision = #tpu.contract_precision<fp32>} : vector<8x8xf32>, vector<8x16xf32>, vector<8x16xf32> -> vector<8x16xf32>
    %c0_25 = arith.constant 0 : index
    %c0_26 = arith.constant 0 : index
    %38 = vector.load %arg16[%c0_25, %c0_26] : memref<8x64xf32, #tpu.memory_space<vmem>>, vector<8x64xf32>
    %39 = tpu.concatenate %22, %27, %32, %37 in 1 : vector<8x16xf32>, vector<8x16xf32>, vector<8x16xf32>, vector<8x16xf32> -> vector<8x64xf32>
    %40 = arith.addf %38, %39 : vector<8x64xf32>
    %c0_27 = arith.constant 0 : index
    %c0_28 = arith.constant 0 : index
    %41 = vector.load %arg16[%c0_27, %c0_28] : memref<8x64xf32, #tpu.memory_space<vmem>>, vector<8x64xf32>
    tpu.vector_store %arg16[%c0_27, %c0_28], %40 {strides = array<i32>} : memref<8x64xf32, #tpu.memory_space<vmem>>, vector<8x64xf32>,
    %c0_i32_29 = arith.constant 0 : i32
    %42 = arith.cmpi eq, %arg2, %c0_i32_29 : i32
    %43 = arith.extui %42 : i1 to i32
    %c0_i32_30 = arith.constant 0 : i32
    %44 = arith.cmpi ne, %43, %c0_i32_30 : i32
    scf.if %44 {
      %c0_31 = arith.constant 0 : index
      %c0_32 = arith.constant 0 : index
      %45 = vector.load %arg16[%c0_31, %c0_32] : memref<8x64xf32, #tpu.memory_space<vmem>>, vector<8x64xf32>
      %c0_33 = arith.constant 0 : index
      %c0_34 = arith.constant 0 : index
      %46 = vector.load %arg12[%c0_33, %c0_34] : memref<64x32xf32, #tpu.memory_space<vmem>>, vector<64x32xf32>
      %cst_35 = arith.constant dense<0.000000e+00> : vector<8x32xf32>
      %47 = tpu.matmul %45, %46, %cst_35 {dimension_numbers = #tpu.dot_dimension_numbers<[1], [0], [0], [1], [0, 0, 1, 1], [], []>, precision = #tpu.contract_precision<fp32>} : vector<8x64xf32>, vector<64x32xf32>, vector<8x32xf32> -> vector<8x32xf32>
      %c0_36 = arith.constant 0 : index
      %c0_37 = arith.constant 0 : index
      %48 = vector.load %arg13[%c0_36, %c0_37] : memref<1x32xf32, #tpu.memory_space<vmem>>, vector<1x32xf32>
      %49 = vector.broadcast %48 : vector<1x32xf32> to vector<8x32xf32>
      %50 = arith.addf %47, %49 : vector<8x32xf32>
      %c0_38 = arith.constant 0 : index
      %c0_39 = arith.constant 0 : index
      %c0_40 = arith.constant 0 : index
      %51 = vector.load %arg14[%c0_38, %c0_39, %c0_40] : memref<1x8x32xf32, #tpu.memory_space<vmem>>, vector<1x8x32xf32>
      %52 = vector.shape_cast %51 : vector<1x8x32xf32> to vector<8x32xf32>
      %53 = vector.shape_cast %50 : vector<8x32xf32> to vector<1x8x32xf32>
      tpu.vector_store %arg14[%c0_38, %c0_39, %c0_40], %53 {strides = array<i32>} : memref<1x8x32xf32, #tpu.memory_space<vmem>>, vector<1x8x32xf32>,
    } else {
    }
    return
  }
  func.func @transform_0(%arg0: i32, %arg1: i32, %arg2: i32) -> (i32, i32, i32) {
    %c0_i32 = arith.constant 0 : i32
    %c0_i32_0 = arith.constant 0 : i32
    return %arg0, %arg1, %c0_i32 : i32, i32, i32
  }
  func.func @transform_1(%arg0: i32, %arg1: i32, %arg2: i32) -> (i32, i32, i32) {
    %c0_i32 = arith.constant 0 : i32
    %c0_i32_0 = arith.constant 0 : i32
    return %arg0, %arg2, %c0_i32 : i32, i32, i32
  }
  func.func @transform_2(%arg0: i32, %arg1: i32, %arg2: i32) -> (i32, i32, i32) {
    %c0_i32 = arith.constant 0 : i32
    %c0_i32_0 = arith.constant 0 : i32
    return %arg0, %arg2, %c0_i32 : i32, i32, i32
  }
  func.func @transform_3(%arg0: i32, %arg1: i32, %arg2: i32) -> (i32, i32) {
    %c0_i32 = arith.constant 0 : i32
    %c0_i32_0 = arith.constant 0 : i32
    %c0_i32_1 = arith.constant 0 : i32
    return %c0_i32, %c0_i32_0 : i32, i32
  }
  func.func @transform_4(%arg0: i32, %arg1: i32, %arg2: i32) -> (i32, i32) {
    %c0_i32 = arith.constant 0 : i32
    %c0_i32_0 = arith.constant 0 : i32
    %c0_i32_1 = arith.constant 0 : i32
    return %c0_i32, %c0_i32_0 : i32, i32
  }
  func.func @transform_5(%arg0: i32, %arg1: i32, %arg2: i32) -> (i32, i32) {
    %c0_i32 = arith.constant 0 : i32
    %c0_i32_0 = arith.constant 0 : i32
    %c0_i32_1 = arith.constant 0 : i32
    return %c0_i32, %c0_i32_0 : i32, i32
  }
  func.func @transform_6(%arg0: i32, %arg1: i32, %arg2: i32) -> (i32, i32) {
    %c0_i32 = arith.constant 0 : i32
    %c0_i32_0 = arith.constant 0 : i32
    %c0_i32_1 = arith.constant 0 : i32
    return %c0_i32, %c0_i32_0 : i32, i32
  }
  func.func @transform_7(%arg0: i32, %arg1: i32, %arg2: i32) -> (i32, i32) {
    %c0_i32 = arith.constant 0 : i32
    %c0_i32_0 = arith.constant 0 : i32
    %c0_i32_1 = arith.constant 0 : i32
    return %c0_i32, %c0_i32_0 : i32, i32
  }
  func.func @transform_8(%arg0: i32, %arg1: i32, %arg2: i32) -> (i32, i32) {
    %c0_i32 = arith.constant 0 : i32
    %c0_i32_0 = arith.constant 0 : i32
    %c0_i32_1 = arith.constant 0 : i32
    return %c0_i32, %c0_i32_0 : i32, i32
  }
  func.func @transform_9(%arg0: i32, %arg1: i32, %arg2: i32) -> (i32, i32) {
    %c0_i32 = arith.constant 0 : i32
    %c0_i32_0 = arith.constant 0 : i32
    %c0_i32_1 = arith.constant 0 : i32
    return %c0_i32, %c0_i32_0 : i32, i32
  }
  func.func @transform_10(%arg0: i32, %arg1: i32, %arg2: i32) -> (i32, i32) {
    %c0_i32 = arith.constant 0 : i32
    %c0_i32_0 = arith.constant 0 : i32
    %c0_i32_1 = arith.constant 0 : i32
    return %c0_i32, %c0_i32_0 : i32, i32
  }
  func.func @transform_11(%arg0: i32, %arg1: i32, %arg2: i32) -> (i32, i32, i32) {
    %c0_i32 = arith.constant 0 : i32
    %c0_i32_0 = arith.constant 0 : i32
    return %arg0, %arg1, %c0_i32 : i32, i32, i32
  }
}

</mosaic_0001>

<bundles_post_ra>
// kernel: tpu_custom_call.1
= control target key start
LH: loop header
LB: loop body
LE: loop exit
PB: predicated region body
PF: predicated region fallthrough
CT: control target
= control target key end

     0   :  { %s9316_s0 = inlined_call_operand.hbm [shape: f32[2,8,32], index: 0, kind: input, shape index: {}]   ;;  %s9317_s1 = inlined_call_operand.hbm [shape: f32[2,8,32], index: 1, kind: input, shape index: {}]   ;;  %s9318_s2 = inlined_call_operand.hbm [shape: f32[2,8,32], index: 2, kind: input, shape index: {}]   ;;  %s9319_s3 = inlined_call_operand.hbm [shape: f32[32,64], index: 3, kind: input, shape index: {}]   ;;  %s9320_s4 = inlined_call_operand.hbm [shape: f32[1,64], index: 4, kind: input, shape index: {}]   ;;  %s9321_s5 = inlined_call_operand.hbm [shape: f32[32,64], index: 5, kind: input, shape index: {}]   ;;  %s9322_s6 = inlined_call_operand.hbm [shape: f32[1,64], index: 6, kind: input, shape index: {}]   ;;  %s9323_s7 = inlined_call_operand.hbm [shape: f32[32,64], index: 7, kind: input, shape index: {}]   ;;  %s9324_s8 = inlined_call_operand.hbm [shape: f32[1,64], index: 8, kind: input, shape index: {}]   ;;  %s9325_s9 = inlined_call_operand.hbm [shape: f32[64,32], index: 9, kind: input, shape index: {}]   ;;  %s9326_s10 = inlined_call_operand.hbm [shape: f32[1,32], index: 10, kind: input, shape index: {}]   ;;  %s9327_s11 = inlined_call_operand.hbm [shape: f32[2,8,32], index: 11, kind: output, shape index: {}]  }
   0x1   :  { %9349 = sst [smem:[#allocation36_spill]] %s9316_s0 }
   0x2   :  { %9350 = sst [smem:[#allocation37_spill]] %s9317_s1 }
   0x3   :  { %9351 = sst [smem:[#allocation38_spill]] %s9318_s2 }
   0x4   :  { %9352 = sst [smem:[#allocation39_spill]] %s9319_s3 }
   0x5   :  { %9353 = sst [smem:[#allocation40_spill]] %s9321_s5 }
   0x6   :  { %9354 = sst [smem:[#allocation41_spill]] %s9323_s7 }
   0x7   :  { %9355 = sst [smem:[#allocation42_spill]] %s9325_s9 }
   0x8   :  { %9356 = sst [smem:[#allocation43_spill]] %s9327_s11 }
   0x9   :  { %16 = vsyncpa [#allocation5], 0 }
   0xa   :  { %18 = vsyncpa [#allocation5 + $0x1], 0 }
   0xb   :  { %19 = vsyncpa [#allocation8], 0 }
   0xc   :  { %21 = vsyncpa [#allocation8 + $0x1], 0 }
   0xd   :  { %22 = vsyncpa [#allocation11], 0 }
   0xe   :  { %23 = vsyncpa [#allocation14], 0 }
   0xf   :  { %24 = vsyncpa [#allocation17], 0 }
  0x10   :  { %25 = vsyncpa [#allocation20], 0 }
  0x11   :  { %26 = vsyncpa [#allocation6], 0 }
  0x12   :  { %28 = vsyncpa [#allocation6 + $0x1], 0  ;;  %s8341_s17 = smov 0   ;;  %s8343_s18 = smov 0  }
  0x13   :  { %s8345_s19 = smov 0   ;;  %s8347_s20 = smov 0  }
  0x14   :  { %s8349_s21 = smov 0   ;;  %s8351_s22 = smov 0  }
  0x15 LB: > { %9357 = sst [smem:[#allocation30_spill]] %s8248_s20  ;;  %s8372_s23 = sadd.s32 4294967295, %s8256_s22   ;;  %s8256_s22 = sphi %s8351_s22, %s34_s22   ;;  %s8252_s21 = sphi %s8349_s21, %s9406_s21   ;;  %s8248_s20 = sphi %s8347_s20, %s9410_s20   ;;  %s8244_s19 = sphi %s8345_s19, %s9409_s19   ;;  %s8240_s18 = sphi %s8343_s18, %s9408_s18   ;;  %s8236_s17 = sphi %s8341_s17, %s9407_s17  }
  0x16   : > { %9358 = sst [smem:[#allocation31_spill]] %s8252_s21  ;;  %p6544_p0 = scmp.ge.s32.totalorder %s8256_s22, 1 }
  0x17   : > { %9359 = sst [smem:[#allocation32_spill]] %s8256_s22  ;;  %p9332_p1 = scmp.eq.s32.totalorder %s8372_s23, 0 }
  0x18   : > { %p338_p2 = scmp.lt.s32.totalorder %s8256_s22, 3  ;;  %s8258_s25 = smov [#allocation10]  }
  0x19   : > { %s350_s26 = sshll.u32 %s8258_s25, 4  ;;  %s8259_s28 = smov [#allocation13]   ;;  %s8381_s26 = int_to_ptr.vmem [resolvable:$true] %s350_s26 }
  0x1a   : > { %p8377_p3 = pnand %p6544_p0, %p338_p2  ;;  %s374_s29 = sshll.u32 %s8259_s28, 4  ;;  %s8392_s29 = int_to_ptr.vmem [resolvable:$true] %s374_s29 }
  0x1b   : > { %s8260_s30 = smov [#allocation16]   ;;  %s9363_s3 = sld [smem:[#allocation39_spill]] }
  0x1c   : > { %s9360_s24 = scalar_select %p8377_p3, 1, 0 }
  0x1d   : > { %p7716_p4 = pneg %p8377_p3  ;;  %s8394_s12 = sshll.u32 %s8260_s30, 4  ;;  %s399_s12 = int_to_ptr.vmem [resolvable:$true] %s8394_s12 }
  0x1e   : > { %9361 = sst [smem:[#allocation33_spill]] %s9360_s24 }
  0x1f   : > { %p8388_p6 = pnand %p7716_p4, %p9332_p1 }
  0x21   : > { %s9362_s27 = scalar_select %p8388_p6, 1, 0 }
  0x22   : > { %s7840_s15 = scalar_lea.hbm %s9363_s3, 512  ;;  %p8404_p8 = pneg %p8388_p6 }
  0x23   : > { %p7841_p7 = scmp.ne.s32.totalorder %s9363_s3, %s7840_s15  ;;  %p7847_p11 = scmp.lt.u32.totalorder %s7840_s15, %s9363_s3 }
  0x24   : > { %s9364_s11 = scalar_select %p8404_p8, 1, 0 }
  0x25   : > { %p7843_p9 = pnand %p8404_p8, %p7841_p7 }
  0x27   : > { %p7844_p10 = pneg %p7843_p9 }
  0x29   : > { %p7849_p12 = pnand %p7847_p11, %p7844_p10 }
  0x2b   : > { %7852 = shalt.err (!%p7849_p12)
}
  0x2c   : > { %s7853_s13 = scalar_lea.vmem %s8381_s26, 512  ;;  %p7861_p4 = scmp.lt.s32.totalorder %s8381_s26, %s8381_s26 }
  0x2d   : > { %p7854_p13 = scmp.ne.s32.totalorder %s8381_s26, %s7853_s13  ;;  %p7862_p5 = scmp.lt.s32.totalorder %s7853_s13, %s7853_s13 }
  0x2f   : > { %p7856_p0 = pnand %p7854_p13, %p8404_p8  ;;  %p7863_p7 = por %p7862_p5, %p7861_p4 }
  0x31   : > { %p7857_p2 = pneg %p7856_p0 }
  0x33   : > { %p7864_p9 = pnand %p7863_p7, %p7857_p2 }
  0x35   : > { %7867 = shalt.err (!%p7864_p9)
}
  0x36   : > { %s8261_s14 = smov 128   ;;  %s8262_s15 = smov 8  }
  0x37   : > { %7719 = dma.hbm_to_vmem [thread:$0]  (!%p8388_p6), %s9363_s3, 512, %s8381_s26, [#allocation11], %s8261_s14, %s8261_s14, %s8262_s15  }
  0x38   : > { %s9365_s5 = sld [smem:[#allocation40_spill]] }
  0x3e   : > { %s7868_s13 = scalar_lea.hbm %s9365_s5, 512 }
  0x3f   : > { %p7869_p5 = scmp.ne.s32.totalorder %s9365_s5, %s7868_s13  ;;  %p7875_p12 = scmp.lt.u32.totalorder %s7868_s13, %s9365_s5 }
  0x41   : > { %p7871_p10 = pnand %p7869_p5, %p8404_p8 }
  0x43   : > { %p7872_p11 = pneg %p7871_p10 }
  0x45   : > { %p7877_p13 = pnand %p7875_p12, %p7872_p11 }
  0x47   : > { %7880 = shalt.err (!%p7877_p13)
}
  0x48   : > { %s7881_s26 = scalar_lea.vmem %s8392_s29, 512  ;;  %p7889_p7 = scmp.lt.s32.totalorder %s8392_s29, %s8392_s29 }
  0x49   : > { %p7882_p0 = scmp.ne.s32.totalorder %s8392_s29, %s7881_s26  ;;  %p7890_p9 = scmp.lt.s32.totalorder %s7881_s26, %s7881_s26 }
  0x4b   : > { %p7884_p2 = pnand %p7882_p0, %p8404_p8  ;;  %p7891_p5 = por %p7890_p9, %p7889_p7 }
  0x4d   : > { %p7885_p4 = pneg %p7884_p2 }
  0x4f   : > { %p7892_p10 = pnand %p7891_p5, %p7885_p4 }
  0x51   : > { %7895 = shalt.err (!%p7892_p10)
}
  0x52   : > { %7725 = dma.hbm_to_vmem [thread:$0]  (!%p8388_p6), %s9365_s5, 512, %s8392_s29, [#allocation14], %s8261_s14, %s8261_s14, %s8262_s15  }
  0x53   : > { %s9366_s7 = sld [smem:[#allocation41_spill]] }
  0x59   : > { %s7896_s16 = scalar_lea.hbm %s9366_s7, 512 }
  0x5a   : > { %p7897_p11 = scmp.ne.s32.totalorder %s9366_s7, %s7896_s16  ;;  %p7903_p0 = scmp.lt.u32.totalorder %s7896_s16, %s9366_s7 }
  0x5c   : > { %p7899_p12 = pnand %p7897_p11, %p8404_p8 }
  0x5e   : > { %p7900_p13 = pneg %p7899_p12 }
  0x60   : > { %p7905_p2 = pnand %p7903_p0, %p7900_p13 }
  0x62   : > { %7908 = shalt.err (!%p7905_p2)
}
  0x63   : > { %s7909_s26 = scalar_lea.vmem %s399_s12, 512  ;;  %p7917_p5 = scmp.lt.s32.totalorder %s399_s12, %s399_s12 }
  0x64   : > { %p7910_p4 = scmp.ne.s32.totalorder %s399_s12, %s7909_s26  ;;  %p7918_p10 = scmp.lt.s32.totalorder %s7909_s26, %s7909_s26 }
  0x66   : > { %p7912_p7 = pnand %p7910_p4, %p8404_p8  ;;  %p7919_p1 = por %p7918_p10, %p7917_p5 }
  0x68   : > { %p7913_p9 = pneg %p7912_p7 }
  0x6a   : > { %p7920_p3 = pnand %p7919_p1, %p7913_p9 }
  0x6c   : > { %7923 = shalt.err (!%p7920_p3)
}
  0x6d   : > { %7731 = dma.hbm_to_vmem [thread:$0]  (!%p8388_p6), %s9366_s7, 512, %s399_s12, [#allocation17], %s8261_s14, %s8261_s14, %s8262_s15  }
  0x6e   : > { %s8263_s2 = smov [#allocation19]   ;;  %s9367_s9 = sld [smem:[#allocation42_spill]] }
  0x6f   : > { %s422_s20 = sshll.u32 %s8263_s2, 4  ;;  %s423_s20 = int_to_ptr.vmem [resolvable:$true] %s422_s20 }
  0x74   : > { %s7924_s25 = scalar_lea.hbm %s9367_s9, 1024 }
  0x75   : > { %p7925_p1 = scmp.ne.s32.totalorder %s9367_s9, %s7924_s25  ;;  %p7931_p12 = scmp.lt.u32.totalorder %s7924_s25, %s9367_s9 }
  0x77   : > { %p7927_p3 = pnand %p7925_p1, %p8404_p8 }
  0x79   : > { %p7928_p11 = pneg %p7927_p3 }
  0x7b   : > { %p7933_p13 = pnand %p7931_p12, %p7928_p11 }
  0x7d   : > { %7936 = shalt.err (!%p7933_p13)
}
  0x7e   : > { %s7937_s12 = scalar_lea.vmem %s423_s20, 1024  ;;  %p7945_p7 = scmp.lt.s32.totalorder %s423_s20, %s423_s20 }
  0x7f   : > { %p7938_p0 = scmp.ne.s32.totalorder %s423_s20, %s7937_s12  ;;  %p7946_p9 = scmp.lt.s32.totalorder %s7937_s12, %s7937_s12 }
  0x81   : > { %p7940_p2 = pnand %p7938_p0, %p8404_p8  ;;  %p7947_p5 = por %p7946_p9, %p7945_p7 }
  0x83   : > { %p7941_p4 = pneg %p7940_p2 }
  0x85   : > { %p7948_p10 = pnand %p7947_p5, %p7941_p4 }
  0x87   : > { %7951 = shalt.err (!%p7948_p10)
}
  0x88   : > { %7737 = dma.hbm_to_vmem [thread:$0]  (!%p8388_p6), %s9367_s9, 1024, %s423_s20, [#allocation20], %s8261_s14, %s8261_s14, %s8262_s15  }
  0x89   : > { %s6543_s2 = sadd.s32 4294967294, %s8256_s22   ;;  %s53_s24 = sadd.s32 1, %s8252_s21 }
  0x8a   : > { %p55_p1 = scmp.ge.s32.totalorder %s53_s24, 2  ;;  %s62_s16 = sadd.s32 1, %s8244_s19 }
  0x8b   : > { %p69_p3 = scmp.ne.s32.totalorder %s8244_s19, %s8240_s18  ;;  %p70_p11 = scmp.eq.s32.totalorder %s8256_s22, 0 }
  0x8c   : > { %s9412_s24 = smov (%p55_p1, %s53_s24), 0  ;;  %p75_p13 = scmp.ne.s32.totalorder %s8240_s18, %s8236_s17 }
  0x8d   : > { %9368 = sst [smem:[#allocation34_spill]] %s9412_s24  ;;  %p8505_p12 = por %p70_p11, %p69_p3 }
  0x8e   : > { %s57_s14 = ssub.s32 %s8252_s21, %s9412_s24  ;;  %p325_p0 = scmp.eq.s32.totalorder %s8372_s23, 1 }
  0x8f   : > { %p60_p2 = scmp.eq.s32.totalorder %s57_s14, 0  ;;  %p9370_p4 = scmp.eq.s32.totalorder %s8372_s23, 0 }
  0x90   : > { %p8520_p9 = por %p325_p0, %p69_p3  ;;  %p331_p5 = scmp.eq.s32.totalorder %s6543_s2, 1 }
  0x91   : > { %p8516_p7 = por %p9370_p4, %p75_p13  ;;  %p7763_p1 = scmp.lt.s32.totalorder %s8256_s22, 2 }
  0x92   : > { %s9372_s20 = scalar_select %p8520_p9, 1, 0 }
  0x93   : > { %s9371_s15 = scalar_select %p8516_p7, 1, 0 }
  0x94   : > { %s8525_s28 = scalar_select %p60_p2, %s8244_s19, %s62_s16  }
  0x95   : > { %p8527_p10 = por %p331_p5, %p75_p13  ;;  %s9334_s13 = sand.u32 1, %s8244_s19  }
  0x96   : > { %9373 = sst [smem:[#allocation35_spill]] %s8525_s28  ;;  %s8534_s26 = sshll.u32 %s8252_s21, 7 }
  0x97   : > { %s9374_s30 = scalar_select %p8527_p10, 1, 0 }
  0x98   : > { %s8538_s12 = sshll.u32 %s9334_s13, 3  ;;  %p8542_p3 = pnand %p7763_p1, %p8505_p12 }
  0x99   : > { %s466_s0 = sand.u32 1, %s8256_s22   ;;  %s9376_s1 = sld [smem:[#allocation37_spill]] }
  0x9a   : > { %s9375_s29 = scalar_select %p8542_p3, 1, 0 }
  0x9b   : > { %s470_s3 = scalar_lea.vmem [#allocation7], %s8538_s12  ;;  %s8556_s25 = scalar_lea.sflag [#allocation8], %s466_s0 }
  0x9c   : > { %s478_s13 = sshll.u32 %s470_s3, 4  ;;  %p8562_p12 = pneg %p8542_p3  ;;  %s8554_s13 = int_to_ptr.vmem [resolvable:$true] %s478_s13 }
  0x9e   : > { %s9377_s7 = scalar_select %p8562_p12, 1, 0 }
  0x9f   : > { %s8551_s14 = scalar_lea.hbm %s9376_s1, %s8534_s26  ;;  %s7957_s9 = scalar_lea.hbm %s9376_s1, 256 }
  0xa0   : > { %s7952_s5 = scalar_lea.hbm %s8551_s14, 128  ;;  %p7958_p2 = scmp.lt.u32.totalorder %s8551_s14, %s9376_s1 }
  0xa1   : > { %p7953_p11 = scmp.ne.s32.totalorder %s8551_s14, %s7952_s5  ;;  %p7959_p4 = scmp.lt.u32.totalorder %s7957_s9, %s7952_s5 }
  0xa2   : > { %p7961_p1 = scmp.lt.u32.totalorder %s7952_s5, %s8551_s14 }
  0xa3   : > { %p7955_p13 = pnand %p8562_p12, %p7953_p11  ;;  %p7960_p5 = por %p7959_p4, %p7958_p2 }
  0xa5   : > { %p7956_p0 = pneg %p7955_p13  ;;  %p7962_p10 = por %p7961_p1, %p7960_p5 }
  0xa7   : > { %p7963_p9 = pnand %p7962_p10, %p7956_p0 }
  0xa9   : > { %7966 = shalt.err (!%p7963_p9)
}
  0xaa   : > { %s7967_s0 = scalar_lea.vmem %s8554_s13, 128  ;;  %s8264_s2 = smov [#allocation7]  }
  0xab   : > { %p7968_p11 = scmp.ne.s32.totalorder %s8554_s13, %s7967_s0  ;;  %s7972_s16 = sshll.u32 %s8264_s2, 4  ;;  %s7973_s16 = int_to_ptr.vmem [resolvable:$false] %s7972_s16 }
  0xac   : > { %s7974_s24 = scalar_lea.vmem %s7973_s16, 256  ;;  %p7975_p6 = scmp.lt.s32.totalorder %s8554_s13, %s7973_s16 }
  0xad   : > { %p7970_p13 = pnand %p7968_p11, %p8562_p12  ;;  %p7976_p8 = scmp.lt.s32.totalorder %s7974_s24, %s7967_s0 }
  0xaf   : > { %p7971_p7 = pneg %p7970_p13  ;;  %p7977_p2 = por %p7976_p8, %p7975_p6 }
  0xb1   : > { %p7978_p4 = pnand %p7977_p2, %p7971_p7 }
  0xb3   : > { %7981 = shalt.err (!%p7978_p4)
}
  0xb4   : > { %7747 = dma.hbm_to_vmem [thread:$0]  (!%p8542_p3), %s8551_s14, 128, %s8554_s13, %s8556_s25  }
  0xb5   : > { %s8265_s5 = smov [#allocation12]   ;;  %s8266_s3 = smov [#allocation15]  }
  0xb6   : > { %s364_s9 = sshll.u32 %s8265_s5, 4  ;;  %s388_s1 = sshll.u32 %s8266_s3, 4  ;;  %s365_s9 = int_to_ptr.vmem [resolvable:$true] %s364_s9  ;;  %s389_s1 = int_to_ptr.vmem [resolvable:$true] %s388_s1 }
  0xb7   : > { %s7982_s16 = scalar_lea.hbm %s9320_s4, 16  ;;  %p9378_p8 = scmp.ne.s32.totalorder %s9364_s11, 0 }
  0xb8   : > { %p7983_p6 = scmp.ne.s32.totalorder %s9320_s4, %s7982_s16  ;;  %p7989_p10 = scmp.lt.u32.totalorder %s7982_s16, %s9320_s4 }
  0xba   : > { %p7985_p7 = pnand %p7983_p6, %p9378_p8 }
  0xbc   : > { %p7986_p9 = pneg %p7985_p7 }
  0xbe   : > { %p7991_p0 = pnand %p7989_p10, %p7986_p9 }
  0xc0   : > { %7994 = shalt.err (!%p7991_p0)
}
  0xc1   : > { %s7995_s13 = scalar_lea.vmem %s365_s9, 16  ;;  %s8002_s21 = scalar_lea.vmem %s365_s9, 32 }
  0xc2   : > { %p7996_p5 = scmp.ne.s32.totalorder %s365_s9, %s7995_s13  ;;  %p8003_p13 = scmp.lt.s32.totalorder %s365_s9, %s365_s9 }
  0xc3   : > { %p8004_p2 = scmp.lt.s32.totalorder %s8002_s21, %s7995_s13 }
  0xc4   : > { %p7998_p1 = pnand %p7996_p5, %p9378_p8 }
  0xc5   : > { %p8005_p4 = por %p8004_p2, %p8003_p13 }
  0xc6   : > { %p7999_p11 = pneg %p7998_p1 }
  0xc8   : > { %p8006_p3 = pnand %p8005_p4, %p7999_p11 }
  0xca   : > { %8009 = shalt.err (!%p8006_p3)
}
  0xcb   : > { %p9379_p6 = scmp.ne.s32.totalorder %s9362_s27, 0  ;;  %s8010_s3 = scalar_lea.hbm %s9322_s6, 16 }
  0xcc   : > { %p8011_p7 = scmp.ne.s32.totalorder %s9322_s6, %s8010_s3  ;;  %p8017_p3 = scmp.lt.u32.totalorder %s8010_s3, %s9322_s6 }
  0xcd   : > { %7722 = dma.hbm_to_vmem [thread:$0]  (!%p9379_p6), %s9320_s4, 16, %s365_s9, [#allocation11]  }
  0xce   : > { %p8013_p9 = pnand %p8011_p7, %p9378_p8 }
  0xd0   : > { %p8014_p10 = pneg %p8013_p9 }
  0xd2   : > { %p8019_p0 = pnand %p8017_p3, %p8014_p10 }
  0xd4   : > { %8022 = shalt.err (!%p8019_p0)
}
  0xd5   : > { %s8023_s13 = scalar_lea.vmem %s389_s1, 16  ;;  %s8030_s9 = scalar_lea.vmem %s389_s1, 32 }
  0xd6   : > { %p8024_p5 = scmp.ne.s32.totalorder %s389_s1, %s8023_s13  ;;  %p8031_p13 = scmp.lt.s32.totalorder %s389_s1, %s389_s1 }
  0xd7   : > { %p8032_p2 = scmp.lt.s32.totalorder %s8030_s9, %s8023_s13 }
  0xd8   : > { %p8026_p1 = pnand %p8024_p5, %p9378_p8 }
  0xd9   : > { %p8033_p4 = por %p8032_p2, %p8031_p13 }
  0xda   : > { %p8027_p11 = pneg %p8026_p1 }
  0xdc   : > { %p8034_p12 = pnand %p8033_p4, %p8027_p11 }
  0xde   : > { %8037 = shalt.err (!%p8034_p12)
}
  0xdf   : > { %7728 = dma.hbm_to_vmem [thread:$0]  (!%p9379_p6), %s9322_s6, 16, %s389_s1, [#allocation14]  }
  0xe0   : > { %s8267_s5 = smov [#allocation18]   ;;  %s8268_s28 = smov [#allocation21]  }
  0xe1   : > { %s412_s22 = sshll.u32 %s8267_s5, 4  ;;  %s436_s3 = sshll.u32 %s8268_s28, 4  ;;  %s413_s22 = int_to_ptr.vmem [resolvable:$true] %s412_s22  ;;  %s437_s3 = int_to_ptr.vmem [resolvable:$true] %s436_s3 }
  0xe2   : > { %s8038_s0 = scalar_lea.hbm %s9324_s8, 16 }
  0xe3   : > { %p8039_p12 = scmp.ne.s32.totalorder %s9324_s8, %s8038_s0  ;;  %p8045_p10 = scmp.lt.u32.totalorder %s8038_s0, %s9324_s8 }
  0xe5   : > { %p8041_p7 = pnand %p8039_p12, %p9378_p8 }
  0xe7   : > { %p8042_p9 = pneg %p8041_p7 }
  0xe9   : > { %p8047_p3 = pnand %p8045_p10, %p8042_p9 }
  0xeb   : > { %8050 = shalt.err (!%p8047_p3)
}
  0xec   : > { %s8051_s1 = scalar_lea.vmem %s413_s22, 16  ;;  %s8058_s14 = scalar_lea.vmem %s413_s22, 32 }
  0xed   : > { %p8052_p0 = scmp.ne.s32.totalorder %s413_s22, %s8051_s1  ;;  %p8059_p11 = scmp.lt.s32.totalorder %s413_s22, %s413_s22 }
  0xee   : > { %p8060_p13 = scmp.lt.s32.totalorder %s8058_s14, %s8051_s1 }
  0xef   : > { %p8054_p5 = pnand %p8052_p0, %p9378_p8 }
  0xf0   : > { %p8061_p2 = por %p8060_p13, %p8059_p11 }
  0xf1   : > { %p8055_p1 = pneg %p8054_p5 }
  0xf3   : > { %p8062_p4 = pnand %p8061_p2, %p8055_p1 }
  0xf5   : > { %8065 = shalt.err (!%p8062_p4)
}
  0xf6   : > { %7734 = dma.hbm_to_vmem [thread:$0]  (!%p9379_p6), %s9324_s8, 16, %s413_s22, [#allocation17]  }
  0xf7   : > { %s8066_s0 = scalar_lea.hbm %s9326_s10, 16 }
  0xf8   : > { %p8067_p12 = scmp.ne.s32.totalorder %s9326_s10, %s8066_s0  ;;  %p8073_p10 = scmp.lt.u32.totalorder %s8066_s0, %s9326_s10 }
  0xfa   : > { %p8069_p7 = pnand %p8067_p12, %p9378_p8 }
  0xfc   : > { %p8070_p9 = pneg %p8069_p7 }
  0xfe   : > { %p8075_p3 = pnand %p8073_p10, %p8070_p9 }
 0x100   : > { %8078 = shalt.err (!%p8075_p3)
}
 0x101   : > { %s8079_s1 = scalar_lea.vmem %s437_s3, 16  ;;  %s8086_s22 = scalar_lea.vmem %s437_s3, 32 }
 0x102   : > { %p8080_p0 = scmp.ne.s32.totalorder %s437_s3, %s8079_s1  ;;  %p8087_p11 = scmp.lt.s32.totalorder %s437_s3, %s437_s3 }
 0x103   : > { %p8088_p13 = scmp.lt.s32.totalorder %s8086_s22, %s8079_s1 }
 0x104   : > { %p8082_p5 = pnand %p8080_p0, %p9378_p8 }
 0x105   : > { %p8089_p2 = por %p8088_p13, %p8087_p11 }
 0x106   : > { %p8083_p1 = pneg %p8082_p5 }
 0x108   : > { %p8090_p4 = pnand %p8089_p2, %p8083_p1 }
 0x10a   : > { %8093 = shalt.err (!%p8090_p4)
}
 0x10b   : > { %7740 = dma.hbm_to_vmem [thread:$0]  (!%p9379_p6), %s9326_s10, 16, %s437_s3, [#allocation20]  }
 0x10c   : > { %s9380_s2 = sld [smem:[#allocation36_spill]]  ;;  %s451_s0 = scalar_lea.vmem [#allocation4], %s8538_s12 }
 0x10d   : > { %s459_s27 = sshll.u32 %s451_s0, 4  ;;  %s9381_s9 = sld [smem:[#allocation38_spill]]  ;;  %s8665_s27 = int_to_ptr.vmem [resolvable:$true] %s459_s27 }
 0x10e   : > { %s9382_s1 = sand.u32 1, %s8244_s19   ;;  %p9383_p6 = scmp.ne.s32.totalorder %s9377_s7, 0 }
 0x10f   : > { %s448_s3 = scalar_lea.sflag [#allocation5], %s9382_s1 }
 0x112   : > { %s8662_s16 = scalar_lea.hbm %s9380_s2, %s8534_s26  ;;  %s8099_s11 = scalar_lea.hbm %s9380_s2, 256 }
 0x113   : > { %s8671_s21 = scalar_lea.hbm %s9381_s9, %s8534_s26  ;;  %s8094_s22 = scalar_lea.hbm %s8662_s16, 128 }
 0x114   : > { %p8095_p8 = scmp.ne.s32.totalorder %s8662_s16, %s8094_s22  ;;  %p8100_p9 = scmp.lt.u32.totalorder %s8662_s16, %s9380_s2 }
 0x115   : > { %p8101_p10 = scmp.lt.u32.totalorder %s8099_s11, %s8094_s22  ;;  %p8103_p0 = scmp.lt.u32.totalorder %s8094_s22, %s8662_s16 }
 0x116   : > { %p8097_p12 = pnand %p8095_p8, %p9383_p6 }
 0x117   : > { %p8102_p3 = por %p8101_p10, %p8100_p9 }
 0x118   : > { %p8098_p7 = pneg %p8097_p12 }
 0x119   : > { %p8104_p5 = por %p8103_p0, %p8102_p3 }
 0x11b   : > { %p8105_p1 = pnand %p8104_p5, %p8098_p7 }
 0x11d   : > { %8108 = shalt.err (!%p8105_p1)
}
 0x11e   : > { %s8109_s26 = scalar_lea.vmem %s8665_s27, 128  ;;  %s8269_s24 = smov [#allocation4]  }
 0x11f   : > { %p8110_p11 = scmp.ne.s32.totalorder %s8665_s27, %s8109_s26  ;;  %s8114_s13 = sshll.u32 %s8269_s24, 4  ;;  %s8115_s13 = int_to_ptr.vmem [resolvable:$false] %s8114_s13 }
 0x120   : > { %s8116_s1 = scalar_lea.vmem %s8115_s13, 256  ;;  %p8117_p4 = scmp.lt.s32.totalorder %s8665_s27, %s8115_s13 }
 0x121   : > { %p8112_p13 = pnand %p8110_p11, %p9383_p6  ;;  %p8118_p8 = scmp.lt.s32.totalorder %s8116_s1, %s8109_s26 }
 0x123   : > { %p8113_p2 = pneg %p8112_p13  ;;  %p8119_p12 = por %p8118_p8, %p8117_p4 }
 0x125   : > { %p8120_p9 = pnand %p8119_p12, %p8113_p2 }
 0x127   : > { %8123 = shalt.err (!%p8120_p9)
}
 0x128   : > { %p9384_p7 = scmp.ne.s32.totalorder %s9375_s29, 0  ;;  %s489_s22 = scalar_lea.vmem [#allocation9], %s8538_s12 }
 0x129   : > { %s497_s14 = sshll.u32 %s489_s22, 4  ;;  %s8124_s5 = scalar_lea.hbm %s8671_s21, 128  ;;  %s498_s14 = int_to_ptr.vmem [resolvable:$true] %s497_s14 }
 0x12a   : > { %7744 = dma.hbm_to_vmem [thread:$0]  (!%p9384_p7), %s8662_s16, 128, %s8665_s27, %s448_s3  }
 0x12b   : > { %p8125_p10 = scmp.ne.s32.totalorder %s8671_s21, %s8124_s5  ;;  %s8129_s0 = scalar_lea.hbm %s9381_s9, 256 }
 0x12c   : > { %p8130_p5 = scmp.lt.u32.totalorder %s8671_s21, %s9381_s9  ;;  %p8131_p1 = scmp.lt.u32.totalorder %s8129_s0, %s8124_s5 }
 0x12d   : > { %p8127_p3 = pnand %p8125_p10, %p9383_p6  ;;  %p8133_p13 = scmp.lt.u32.totalorder %s8124_s5, %s8671_s21 }
 0x12e   : > { %p8132_p11 = por %p8131_p1, %p8130_p5 }
 0x12f   : > { %p8128_p0 = pneg %p8127_p3 }
 0x130   : > { %p8134_p2 = por %p8133_p13, %p8132_p11 }
 0x132   : > { %p8135_p4 = pnand %p8134_p2, %p8128_p0 }
 0x134   : > { %8138 = shalt.err (!%p8135_p4)
}
 0x135   : > { %s8139_s12 = scalar_lea.vmem %s498_s14, 128  ;;  %s8270_s16 = smov [#allocation9]  }
 0x136   : > { %p8140_p8 = scmp.ne.s32.totalorder %s498_s14, %s8139_s12  ;;  %s8144_s27 = sshll.u32 %s8270_s16, 4  ;;  %s8145_s27 = int_to_ptr.vmem [resolvable:$false] %s8144_s27 }
 0x137   : > { %s8146_s3 = scalar_lea.vmem %s8145_s27, 256  ;;  %p8147_p10 = scmp.lt.s32.totalorder %s498_s14, %s8145_s27 }
 0x138   : > { %p8142_p12 = pnand %p8140_p8, %p9383_p6  ;;  %p8148_p3 = scmp.lt.s32.totalorder %s8146_s3, %s8139_s12 }
 0x13a   : > { %p8143_p9 = pneg %p8142_p12  ;;  %p8149_p7 = por %p8148_p3, %p8147_p10 }
 0x13c   : > { %p8150_p1 = pnand %p8149_p7, %p8143_p9 }
 0x13e   : > { %8153 = shalt.err (!%p8150_p1)
}
 0x13f   : > { %p9385_p5 = scmp.ne.s32.totalorder %s9375_s29, 0  ;;  %s9386_s13 = sld [smem:[#allocation33_spill]] }
 0x141   : > { %7750 = dma.hbm_to_vmem [thread:$0]  (!%p9385_p5), %s8671_s21, 128, %s498_s14, %s8556_s25  }
 0x145   : > { %p9387_p0 = scmp.ne.s32.totalorder %s9386_s13, 0 }
 0x146   : > { %s8718_s7 = sand.u32 (!%p9387_p0), 1, %s8240_s18   ;;  %p9388_p6 = scmp.ne.s32.totalorder (!%p9387_p0), %s9371_s15, 0 }
 0x147   : > { %506 = sbr.rel (%p9387_p0) target bundleno = 1758 (0x6de), region = 64  ;;  %s8721_s1 = sshll.u32 (!%p9387_p0), %s8718_s7, 3 }
 0x148   : > { %s509_s22 = scalar_lea.sflag (!%p9387_p0), [#allocation5], %s8718_s7  ;;  %s512_s5 = scalar_lea.vmem (!%p9387_p0), [#allocation4], %s8721_s1 }
 0x14e   : > { %8207 = dma.done.wait (%p9388_p6), %s509_s22, 128  }
 0x14f   : > { %8209 = vsyncadd (%p9388_p6), %s509_s22, 4294967168  ;;  %s517_s29 = sand.u32 1, %s8372_s23   ;;  %s521_s21 = scalar_lea.vmem [#allocation7], %s8721_s1 }
 0x150   : > { %s518_s25 = scalar_lea.sflag [#allocation8], %s517_s29 }
 0x151   : > { %8211 = dma.done.wait (%p9388_p6), %s518_s25, 256  }
 0x152   : > { %8213 = vsyncadd (%p9388_p6), %s518_s25, 4294967040  ;;  %s530_s14 = scalar_lea.vmem [#allocation9], %s8721_s1  ;;  %p9389_p7 = scmp.eq.s32.totalorder %s8372_s23, 0 }
 0x154   : > { %8215 = dma.done.wait (%p9389_p7), [#allocation11], 528   ;;  %p9390_p11 = pmov %p9389_p7 }
 0x155   : > { %p9391_p13 = pmov %p9389_p7 }
 0x156   : > { %8217 = vsyncadd (%p9390_p11), [#allocation11], 4294966768 }
 0x157   : > { %8219 = dma.done.wait (%p9391_p13), [#allocation14], 528   ;;  %p9392_p2 = pmov %p9389_p7 }
 0x159   : > { %8221 = vsyncadd (%p9392_p2), [#allocation14], 4294966768  ;;  %p9393_p4 = pmov %p9392_p2 }
 0x15a   : > { %p9394_p8 = pmov %p9392_p2 }
 0x15b   : > { %8223 = dma.done.wait (%p9393_p4), [#allocation17], 528  }
 0x15c   : > { %8225 = vsyncadd (%p9394_p8), [#allocation17], 4294966768  ;;  %p9395_p12 = pmov %p9392_p2 }
 0x15d   : > { %p9396_p9 = pmov %p9392_p2 }
 0x15e   : > { %8227 = dma.done.wait (%p9395_p12), [#allocation20], 1040  }
 0x15f   : > { %8229 = vsyncadd (%p9396_p9), [#allocation20], 4294966256  ;;  %v8271_v0 = vmov 0.0|0.0   ;;  %vm8272_vm0 = vmmov 0   ;;  %v8273_v1 = vmov 0.0   ;;  %v616_v2 = vld [vmem:[#allocation10] sm:$0xff] }
 0x160   : > { %7373 = vmatprep.subr.bf16.mxu0 %v8271_v0  ;;  %7409 = vmatprep.subr.bf16.mxu1 %v8271_v0  ;;  %v617_v3 = vld [vmem:[#allocation10 + $0x8] sm:$0xff]  ;;  %vm627_vm1 = vcmask 261120   ;;  %v632_v5 = vand.u32 4294901760, %v616_v2  ;;  %v618_v9 = vld [vmem:[#allocation10 + $0x10] sm:$0xff]  ;;  %v619_v10 = vld [vmem:[#allocation10 + $0x18] sm:$0xff]  ;;  %vm1116_vm2 = vcmask 523264  }
 0x161   : > { %6829 = vmatprep.mubr.msk.f32.mxu0 %vm8272_vm0, %v8273_v1  ;;  %6895 = vmatprep.mubr.msk.f32.mxu1 %vm8272_vm0, %v8273_v1  ;;  %v1120_v4 = vld [vmem:[#allocation13] sm:$0xff]  ;;  %v635_v6 = vand.u32 4294901760, %v617_v3  ;;  %v1121_v7 = vld [vmem:[#allocation13 + $0x8] sm:$0xff]  ;;  %v638_v12 = vand.u32 4294901760, %v618_v9  ;;  %v641_v13 = vand.u32 4294901760, %v619_v10  ;;  %v1122_v14 = vld [vmem:[#allocation13 + $0x10] sm:$0xff] }
 0x162   : > { %v1136_v8 = vand.u32 4294901760, %v1120_v4  ;;  %v1139_v11 = vand.u32 4294901760, %v1121_v7  ;;  %v1123_v15 = vld [vmem:[#allocation13 + $0x18] sm:$0xff]  ;;  %v8762_v18 = vsub.f32 %v616_v2, %v632_v5  ;;  %v1142_v27 = vand.u32 4294901760, %v1122_v14  ;;  %1118 = vst.msk [vmem:[#allocation3] sm:$0xff] %vm1116_vm2, %v8273_v1  ;;  %s8274_s23 = smov 96  }
 0x163   : > { %v615_v16 = vld [vmem:[%s512_s5] sm:$0xff]  ;;  %v8760_v17 = vpack.c.bf16 %v635_v6, %v632_v5  ;;  %v8764_v19 = vsub.f32 %v617_v3, %v635_v6  ;;  %v1119_v21 = vld [vmem:[%s521_s21] sm:$0xff]  ;;  %v8774_v24 = vpack.c.bf16 %v641_v13, %v638_v12  ;;  %v8776_v25 = vsub.f32 %v618_v9, %v638_v12  ;;  %s8275_s15 = smov 112   ;;  %s8276_s11 = smov 80  }
 0x164   : > { %v8766_v20 = vsub.f32 %v1120_v4, %v1136_v8  ;;  %v8770_v22 = vpack.c.bf16 %v1139_v11, %v1136_v8  ;;  %v8772_v23 = vsub.f32 %v1121_v7, %v1139_v11  ;;  %v8779_v26 = vsub.f32 %v619_v10, %v641_v13  ;;  %s8277_s28 = smov 16   ;;  %s8278_s0 = smov 32  }
 0x165   : > { %7375 = vmatpush3.bf16.msra.mxu0 %v8760_v17  ;;  %v1145_v28 = vand.u32 4294901760, %v1123_v15  ;;  %v629_v29 = vsel %vm627_vm1, %v615_v16, 0  ;;  %v1133_v31 = vsel %vm627_vm1, %v1119_v21, 0  ;;  %v713_v32 = vand.u32 4294901760, %v8762_v18  ;;  %v1621_v16 = vld [vmem:[#allocation16] sm:$0xff]  ;;  %v1622_v21 = vld [vmem:[#allocation16 + $0x8] sm:$0xff] }
 0x166   : > { %7411 = vmatpush3.bf16.msra.mxu1 %v8770_v22  ;;  %7376 = vmatprep.subr.bf16.mxu0 %v8271_v0  ;;  %v8784_v30 = vand.u32 4294901760, %v629_v29  ;;  %v720_v33 = vand.u32 4294901760, %v8764_v19  ;;  %v8792_v35 = vsub.f32 %v1122_v14, %v1142_v27  ;;  %v8796_v37 = vand.u32 4294901760, %v1133_v31  ;;  %s8279_s26 = smov 48   ;;  %s9397_s24 = sld [smem:[#allocation30_spill]] }
 0x167   : > { %7412 = vmatprep.subr.bf16.mxu1 %v8271_v0  ;;  %v8790_v34 = vpack.c.bf16 %v1145_v28, %v1142_v27  ;;  %v8794_v36 = vsub.f32 %v1123_v15, %v1145_v28  ;;  %v714_v39 = vsub.f32 %v8762_v18, %v713_v32  ;;  %v1217_v41 = vand.u32 4294901760, %v8766_v20  ;;  %v1620_v27 = vld [vmem:[%s530_s14] sm:$0xff]  ;;  %s610_s16 = scalar_lea.vmem [#allocation22], %s8721_s1  ;;  %s9398_s22 = sld [smem:[#allocation43_spill]] }
 0x168   : > { %v8799_v38 = vsub.f32 %v629_v29, %v8784_v30  ;;  %v721_v40 = vsub.f32 %v8764_v19, %v720_v33  ;;  %v8810_v42 = vsub.f32 %v1133_v31, %v8796_v37  ;;  %v1224_v43 = vand.u32 4294901760, %v8772_v23  ;;  %v1623_v29 = vld [vmem:[#allocation16 + $0x10] sm:$0xff]  ;;  %v1624_v31 = vld [vmem:[#allocation16 + $0x18] sm:$0xff]  ;;  %s6338_s27 = sshll.u32 %s610_s16, 4  ;;  %s6324_s25 = scalar_lea.sflag [#allocation6], %s8718_s7  ;;  %s9268_s27 = int_to_ptr.vmem [resolvable:$true] %s6338_s27 }
 0x169   : > { %7378 = vmatpush3.bf16.msra.mxu0 %v8774_v24  ;;  %v727_v44 = vand.u32 4294901760, %v8776_v25  ;;  %v734_v45 = vand.u32 4294901760, %v8779_v26  ;;  %v715_v47 = vand.u32 4294901760, %v714_v39  ;;  %v1218_v49 = vsub.f32 %v8766_v20, %v1217_v41  ;;  %s8154_s21 = scalar_lea.vmem %s9268_s27, 128  ;;  %p9400_p3 = scmp.ne.s32.totalorder %s9372_s20, 0 }
 0x16a   : > { %7414 = vmatpush3.bf16.msra.mxu1 %v8790_v34  ;;  %v702_v46 = vand.u32 4294901760, %v8799_v38  ;;  %7379 = vmatprep.subr.bf16.mxu0 %v8271_v0  ;;  %v722_v48 = vand.u32 4294901760, %v721_v40  ;;  %v1206_v50 = vand.u32 4294901760, %v8810_v42  ;;  %v1225_v51 = vsub.f32 %v8772_v23, %v1224_v43  ;;  %p8155_p10 = scmp.ne.s32.totalorder %s9268_s27, %s8154_s21  ;;  %s8280_s1 = smov [#allocation22]  }
 0x16b   : > { %7415 = vmatprep.subr.bf16.mxu1 %v8271_v0  ;;  %v728_v52 = vsub.f32 %v8776_v25, %v727_v44  ;;  %v735_v53 = vsub.f32 %v8779_v26, %v734_v45  ;;  %v1219_v56 = vand.u32 4294901760, %v1218_v49  ;;  %v1231_v57 = vand.u32 4294901760, %v8792_v35  ;;  %s8158_s14 = sshll.u32 %s8280_s1, 4  ;;  %s8159_s14 = int_to_ptr.vmem [resolvable:$false] %s8158_s14 }
 0x16c   : > { %v703_v54 = vsub.f32 %v8799_v38, %v702_v46  ;;  %v7380_v55 = vpack.c.bf16 %v722_v48, %v715_v47  ;;  %v1207_v58 = vsub.f32 %v8810_v42, %v1206_v50  ;;  %v1226_v59 = vand.u32 4294901760, %v1225_v51  ;;  %s6578_s12 = sshll.u32 %s9397_s24, 7  ;;  %p8156_p1 = pnand %p8155_p10, %p9400_p3 }
 0x16d   : > { %v729_v60 = vand.u32 4294901760, %v728_v52  ;;  %v736_v61 = vand.u32 4294901760, %v735_v53  ;;  %v1232_v63 = vsub.f32 %v8792_v35, %v1231_v57  ;;  %v1238_v2 = vand.u32 4294901760, %v8794_v36  ;;  %s9399_s5 = smov %s9398_s22  ;;  %s9266_s29 = scalar_lea.hbm %s9398_s22, %s6578_s12 }
 0x16e   : > { %v704_v62 = vand.u32 4294901760, %v703_v54  ;;  %v1208_v3 = vand.u32 4294901760, %v1207_v58  ;;  %v7416_v4 = vpack.c.bf16 %v1226_v59, %v1219_v56  ;;  %v7386_v10 = vpack.c.bf16 %v8764_v19, %v8762_v18  ;;  %v6574_v58 = vld [vmem:[#allocation15] ss:$0 sm:$0xff]  ;;  %p8157_p5 = pneg %p8156_p1  ;;  %p8161_p0 = scmp.lt.s32.totalorder %s9268_s27, %s8159_s14 }
 0x16f   : > { %v1233_v5 = vand.u32 4294901760, %v1232_v63  ;;  %v1239_v6 = vsub.f32 %v8794_v36, %v1238_v2  ;;  %v7383_v7 = vpack.c.bf16 %v736_v61, %v729_v60  ;;  %v7422_v11 = vpack.c.bf16 %v8772_v23, %v8766_v20 }
 0x170   : > { %6830 = vmatmul.mubr.f32.vlgmr.msra.gmra.mrb[0].mxu0 %v704_v62  ;;  %6896 = vmatmul.mubr.f32.vlgmr.msra.gmra.mrb[0].mxu1 %v1208_v3  ;;  %v7389_v12 = vpack.c.bf16 %v8779_v26, %v8776_v25  ;;  %v7425_v13 = vpack.c.bf16 %v8794_v36, %v8792_v35  ;;  %v7398_v14 = vpack.c.bf16 %v720_v33, %v713_v32  ;;  %v1636_v19 = vand.u32 4294901760, %v1621_v16 }
 0x171   : > { %7381 = vmatpush3.bf16.msra.mxu0 %v7380_v55  ;;  %7417 = vmatpush3.bf16.msra.mxu1 %v7416_v4  ;;  %v1240_v8 = vand.u32 4294901760, %v1239_v6  ;;  %v7434_v15 = vpack.c.bf16 %v1224_v43, %v1217_v41  ;;  %v7401_v18 = vpack.c.bf16 %v734_v45, %v727_v44  ;;  %v1639_v20 = vand.u32 4294901760, %v1622_v21 }
 0x172   : > { %7382 = vmatprep.subr.bf16.mxu0 %v8271_v0  ;;  %7418 = vmatprep.subr.bf16.mxu1 %v8271_v0  ;;  %v1633_v23 = vsel %vm627_vm1, %v1620_v27, 0  ;;  %v7437_v28 = vpack.c.bf16 %v1238_v2, %v1231_v57  ;;  %v8913_v26 = vsub.f32 %v1621_v16, %v1636_v19  ;;  %v1642_v33 = vand.u32 4294901760, %v1623_v29  ;;  %v6573_v57 = vld [vmem:[#allocation12] ss:$0 sm:$0xff]  ;;  %v6575_v16 = vld [vmem:[#allocation18] ss:$0 sm:$0xff] }
 0x173   : > { %6840 = vmatprep.mubr.msk.f32.mxu0 %vm8272_vm0, %v8273_v1  ;;  %v7419_v9 = vpack.c.bf16 %v1240_v8, %v1233_v5  ;;  %6906 = vmatprep.mubr.msk.f32.mxu1 %vm8272_vm0, %v8273_v1  ;;  %v8911_v25 = vand.u32 4294901760, %v1633_v23  ;;  %v8915_v32 = vsub.f32 %v1622_v21, %v1639_v20  ;;  %v1645_v35 = vand.u32 4294901760, %v1624_v31 }
 0x174   : > { %v1717_v40 = vand.u32 4294901760, %v8913_v26  ;;  %vm2121_vm3 = vcmask 130048   ;;  %vm2574_vm4 = vcmask 64512   ;;  %vm5758_vm5 = vcmask 392192  }
 0x175   : > { %7384 = vmatpush3.bf16.msra.mxu0 %v7383_v7  ;;  %7420 = vmatpush3.bf16.msra.mxu1 %v7419_v9  ;;  %v1705_v36 = vsub.f32 %v1633_v23, %v8911_v25  ;;  %v8925_v39 = vsub.f32 %v1624_v31, %v1645_v35  ;;  %v1724_v41 = vand.u32 4294901760, %v8915_v32  ;;  %v7458_v53 = vpack.c.bf16 %v8915_v32, %v8913_v26 }
 0x176   : > { %7385 = vmatprep.subr.bf16.mxu0 %v8271_v0  ;;  %7421 = vmatprep.subr.bf16.mxu1 %v8271_v0  ;;  %v1718_v43 = vsub.f32 %v8913_v26, %v1717_v40 }
 0x177   : > { %v1725_v44 = vsub.f32 %v8915_v32, %v1724_v41  ;;  %v1738_v45 = vand.u32 4294901760, %v8925_v39  ;;  %v7470_v55 = vpack.c.bf16 %v1724_v41, %v1717_v40 }
 0x178   : > { %6841 = vmatmul.mubr.f32.vlgmr.msra.gmra.mrb[0].mxu0 %v8784_v30  ;;  %6907 = vmatmul.mubr.f32.vlgmr.msra.gmra.mrb[0].mxu1 %v8796_v37 }
 0x179   : > { %7387 = vmatpush3.bf16.msra.mxu0 %v7386_v10  ;;  %7423 = vmatpush3.bf16.msra.mxu1 %v7422_v11  ;;  %v1726_v48 = vand.u32 4294901760, %v1725_v44 }
 0x17a   : > { %7388 = vmatprep.subr.bf16.mxu0 %v8271_v0  ;;  %7424 = vmatprep.subr.bf16.mxu1 %v8271_v0 }
 0x17b   : > { %6851 = vmatprep.mubr.msk.f32.mxu0 %vm8272_vm0, %v8273_v1  ;;  %6917 = vmatprep.mubr.msk.f32.mxu1 %vm8272_vm0, %v8273_v1 }
 0x17d   : > { %7390 = vmatpush3.bf16.msra.mxu0 %v7389_v12  ;;  %7426 = vmatpush3.bf16.msra.mxu1 %v7425_v13 }
 0x17e   : > { %7391 = vmatprep.subr.bf16.mxu0 %v8271_v0  ;;  %7427 = vmatprep.subr.bf16.mxu1 %v8271_v0 }
 0x180   : > { %6852 = vmatmul.mubr.f32.vlgmr.msra.gmra.mrb[0].mxu0 %v8799_v38  ;;  %6918 = vmatmul.mubr.f32.vlgmr.msra.gmra.mrb[0].mxu1 %v8810_v42  ;;  %v8923_v38 = vsub.f32 %v1623_v29, %v1642_v33  ;;  %v1706_v42 = vand.u32 4294901760, %v1705_v36 }
 0x181   : > { %7393 = vmatpush3.bf16.msra.mxu0 %v8760_v17  ;;  %7429 = vmatpush3.bf16.msra.mxu1 %v8770_v22 }
 0x182   : > { %7394 = vmatprep.subr.bf16.mxu0 %v8271_v0  ;;  %7430 = vmatprep.subr.bf16.mxu1 %v8271_v0  ;;  %v1707_v47 = vsub.f32 %v1705_v36, %v1706_v42  ;;  %v7461_v54 = vpack.c.bf16 %v8925_v39, %v8923_v38 }
 0x183   : > { %6862 = vmatprep.mubr.msk.f32.mxu0 %vm8272_vm0, %v8273_v1  ;;  %6928 = vmatprep.mubr.msk.f32.mxu1 %vm8272_vm0, %v8273_v1 }
 0x185   : > { %7396 = vmatpush3.bf16.msra.mxu0 %v8774_v24  ;;  %7432 = vmatpush3.bf16.msra.mxu1 %v8790_v34 }
 0x186   : > { %7397 = vmatprep.subr.bf16.mxu0 %v8271_v0  ;;  %7433 = vmatprep.subr.bf16.mxu1 %v8271_v0 }
 0x188   : > { %6863 = vmatmul.mubr.f32.vlgmr.msra.gmra.mrb[0].mxu0 %v702_v46  ;;  %6929 = vmatmul.mubr.f32.vlgmr.msra.gmra.mrb[0].mxu1 %v1206_v50  ;;  %v7449_v46 = vpack.c.bf16 %v1645_v35, %v1642_v33  ;;  %v1739_v50 = vsub.f32 %v8925_v39, %v1738_v45 }
 0x189   : > { %7399 = vmatpush3.bf16.msra.mxu0 %v7398_v14  ;;  %7435 = vmatpush3.bf16.msra.mxu1 %v7434_v15 }
 0x18a   : > { %7400 = vmatprep.subr.bf16.mxu0 %v8271_v0  ;;  %7436 = vmatprep.subr.bf16.mxu1 %v8271_v0 }
 0x18b   : > { %6873 = vmatprep.mubr.msk.f32.mxu0 %vm8272_vm0, %v8273_v1  ;;  %6939 = vmatprep.mubr.msk.f32.mxu1 %vm8272_vm0, %v8273_v1 }
 0x18d   : > { %7402 = vmatpush3.bf16.msra.mxu0 %v7401_v18  ;;  %7438 = vmatpush3.bf16.msra.mxu1 %v7437_v28 }
 0x18e   : > { %7403 = vmatprep.subr.bf16.mxu0 %v8271_v0  ;;  %7439 = vmatprep.subr.bf16.mxu1 %v8271_v0 }
 0x190   : > { %6874 = vmatmul.mubr.f32.vlgmr.msra.gmra.mrb[0].mxu0 %v8784_v30  ;;  %6940 = vmatmul.mubr.f32.vlgmr.msra.gmra.mrb[0].mxu1 %v8796_v37 }
 0x191   : > { %7405 = vmatpush3.bf16.msra.mxu0 %v8760_v17  ;;  %7441 = vmatpush3.bf16.msra.mxu1 %v8770_v22  ;;  %v7446_v17 = vpack.c.bf16 %v1639_v20, %v1636_v19  ;;  %v1731_v22 = vand.u32 4294901760, %v8923_v38 }
 0x192   : > { %7406 = vmatprep.subr.bf16.mxu0 %v8271_v0  ;;  %7442 = vmatprep.subr.bf16.mxu1 %v8271_v0 }
 0x193   : > { %6884 = vmatprep.mubr.msk.f32.mxu0 %vm8272_vm0, %v8273_v1  ;;  %6950 = vmatprep.mubr.msk.f32.mxu1 %vm8272_vm0, %v8273_v1  ;;  %v1732_v49 = vsub.f32 %v8923_v38, %v1731_v22  ;;  %v7473_v56 = vpack.c.bf16 %v1738_v45, %v1731_v22 }
 0x195   : > { %7408 = vmatpush3.bf16.msra.mxu0 %v8774_v24  ;;  %7444 = vmatpush3.bf16.msra.mxu1 %v8790_v34  ;;  %v1719_v24 = vand.u32 4294901760, %v1718_v43  ;;  %v1733_v51 = vand.u32 4294901760, %v1732_v49 }
 0x196   : > { %7445 = vmatprep.subr.bf16.mxu0 %v8271_v0  ;;  %7019 = vmatprep.subr.mxu1 %v8273_v1 }
 0x197   : > { %v7452_v34 = vpack.c.bf16 %v1726_v48, %v1719_v24 }
 0x198   : > { %6885 = vmatmul.mubr.f32.vlgmr.msra.gmra.mrb[0].mxu0 %v8784_v30  ;;  %6951 = vmatmul.mubr.f32.vlgmr.msra.gmra.mrb[0].mxu1 %v8796_v37  ;;  %v1708_v30 = vand.u32 4294901760, %v1707_v47  ;;  %v1740_v37 = vand.u32 4294901760, %v1739_v50 }
 0x199   : > { %7447 = vmatpush3.bf16.msra.mxu0 %v7446_v17  ;;  %6961 = vmatprep.mubr.msk.f32.mxu0 %vm8272_vm0, %v8273_v1 }
 0x19a   : > { %7448 = vmatprep.subr.bf16.mxu0 %v8271_v0  ;;  %7021 = vmatprep.mubr.msk.f32.mxu1 %vm8272_vm0, %v8273_v1  ;;  %v7455_v52 = vpack.c.bf16 %v1740_v37, %v1733_v51 }
 0x19d   : > { %7450 = vmatpush3.bf16.msra.mxu0 %v7449_v46 }
 0x19e   : > { %7451 = vmatprep.subr.bf16.mxu0 %v8271_v0 }
 0x1a0   : > { %6962 = vmatmul.mubr.f32.vlgmr.msra.gmra.mrb[2].mxu0 %v1708_v30 }
 0x1a1   : > { %7453 = vmatpush3.bf16.msra.mxu0 %v7452_v34  ;;  %6972 = vmatprep.mubr.msk.f32.mxu0 %vm8272_vm0, %v8273_v1 }
 0x1a2   : > { %7454 = vmatprep.subr.bf16.mxu0 %v8271_v0 }
 0x1a5   : > { %7456 = vmatpush3.bf16.msra.mxu0 %v7455_v52 }
 0x1a6   : > { %7457 = vmatprep.subr.bf16.mxu0 %v8271_v0 }
 0x1a8   : > { %6973 = vmatmul.mubr.f32.vlgmr.msra.gmra.mrb[2].mxu0 %v8911_v25 }
 0x1a9   : > { %7459 = vmatpush3.bf16.msra.mxu0 %v7458_v53  ;;  %6983 = vmatprep.mubr.msk.f32.mxu0 %vm8272_vm0, %v8273_v1 }
 0x1aa   : > { %7460 = vmatprep.subr.bf16.mxu0 %v8271_v0 }
 0x1ad   : > { %7462 = vmatpush3.bf16.msra.mxu0 %v7461_v54 }
 0x1ae   : > { %7463 = vmatprep.subr.bf16.mxu0 %v8271_v0 }
 0x1b0   : > { %6984 = vmatmul.mubr.f32.vlgmr.msra.gmra.mrb[2].mxu0 %v1705_v36 }
 0x1b1   : > { %7465 = vmatpush3.bf16.msra.mxu0 %v7446_v17  ;;  %6994 = vmatprep.mubr.msk.f32.mxu0 %vm8272_vm0, %v8273_v1 }
 0x1b2   : > { %7466 = vmatprep.subr.bf16.mxu0 %v8271_v0 }
 0x1b5   : > { %7468 = vmatpush3.bf16.msra.mxu0 %v7449_v46 }
 0x1b6   : > { %7469 = vmatprep.subr.bf16.mxu0 %v8271_v0 }
 0x1b8   : > { %6995 = vmatmul.mubr.f32.vlgmr.msra.gmra.mrb[2].mxu0 %v1706_v42 }
 0x1b9   : > { %7005 = vmatprep.mubr.msk.f32.mxu0 %vm8272_vm0, %v8273_v1  ;;  %7471 = vmatpush3.bf16.msra.mxu0 %v7470_v55 }
 0x1ba   : > { %7472 = vmatprep.subr.bf16.mxu0 %v8271_v0 }
 0x1bd   : > { %7474 = vmatpush3.bf16.msra.mxu0 %v7473_v56 }
 0x1be   : > { %7475 = vmatprep.subr.bf16.mxu0 %v8271_v0 }
 0x1c0   : > { %7006 = vmatmul.mubr.f32.vlgmr.msra.gmra.mrb[2].mxu0 %v8911_v25 }
 0x1c1   : > { %7477 = vmatpush3.bf16.msra.mxu0 %v7446_v17  ;;  %7016 = vmatprep.mubr.msk.f32.mxu0 %vm8272_vm0, %v8273_v1 }
 0x1c2   : > { %7478 = vmatprep.subr.bf16.mxu0 %v8271_v0 }
 0x1c5   : > { %7480 = vmatpush3.bf16.msra.mxu0 %v7449_v46 }
 0x1c6   : > { %7079 = vmatprep.subr.mxu0 %v8273_v1 }
 0x1c8   : > { %7017 = vmatmul.mubr.f32.vlgmr.msra.gmra.mrb[2].mxu0 %v8911_v25 }
 0x1c9   : > { %7081 = vmatprep.mubr.msk.f32.mxu0 %vm8272_vm0, %v8273_v1 }
 0x26b   : > { %v1112_v59 = vpop.f32.mrb[0].mxu0  ;;  %v1616_v61 = vpop.f32.mrb[0].mxu1 }
 0x26c   : > { %v7553_v60 = vadd.f32 %v6573_v57, %v1112_v59  ;;  %v6886_v62 = vpop.f32.mrb[1].mxu0  ;;  %v7554_v63 = vadd.f32 %v6574_v58, %v1616_v61  ;;  %v6952_v2 = vpop.f32.mrb[1].mxu1 }
 0x26e   : > { %1117 = vst.msk [vmem:[#allocation2] sm:$0xff] %vm1116_vm2, %v7553_v60  ;;  %v2126_v3 = vsel %vm2121_vm3, %v7554_v63, 0 }
 0x26f   : > { %v2129_v4 = vand.u32 4294901760, %v2126_v3 }
 0x271   : > { %7020 = vmatpush3.xpose.msra.mxu1 %v2129_v4  ;;  %v2206_v5 = vsub.f32 %v2126_v3, %v2129_v4 }
 0x272   : > { %7024 = vmatprep.subr.mxu1 %v8273_v1 }
 0x273   : > { %v2207_v9 = vand.u32 4294901760, %v2206_v5 }
 0x275   : > { %v2120_v6 = vld [vmem:[#allocation2] sm:$0xff]  ;;  %v2208_v12 = vsub.f32 %v2206_v5, %v2207_v9 }
 0x276   : > { %3931 = vrot.lane.b32.xlu1 %v2120_v6, %s8274_s23  ;;  %v2123_v7 = vsel %vm2121_vm3, %v2120_v6, 0  ;;  %3024 = vrot.lane.b32.xlu0 %v2120_v6, %s8275_s15 }
 0x277   : > { %v2194_v8 = vand.u32 4294901760, %v2123_v7  ;;  %v2209_v15 = vand.u32 4294901760, %v2208_v12 }
 0x279   : > { %v2195_v10 = vsub.f32 %v2123_v7, %v2194_v8 }
 0x27a   : > { %3933 = vrot.lane.b32.xlu1 %v7554_v63, %s8274_s23  ;;  %3026 = vrot.lane.b32.xlu0 %v7554_v63, %s8275_s15 }
 0x27b   : > { %v2196_v11 = vand.u32 4294901760, %v2195_v10 }
 0x27d   : > { %v2197_v13 = vsub.f32 %v2195_v10, %v2196_v11 }
 0x27e   : > { %4839 = vrot.lane.b32.xlu1 %v7554_v63, %s8276_s11  ;;  %4837 = vrot.lane.b32.xlu0 %v2120_v6, %s8276_s11 }
 0x27f   : > { %v2198_v14 = vand.u32 4294901760, %v2197_v13 }
 0x281   : > { %7022 = vmatmul.mubr.f32.vlgmr.msra.gmra.mrb[2].mxu1 %v2198_v14 }
 0x282   : > { %7025 = vmatpush3.xpose.msra.mxu1 %v2209_v15  ;;  %7026 = vmatprep.mubr.msk.f32.mxu1 %vm8272_vm0, %v8273_v1 }
 0x283   : > { %7029 = vmatprep.subr.mxu1 %v8273_v1 }
 0x289   : > { %7027 = vmatmul.mubr.f32.vlgmr.msra.gmra.mrb[2].mxu1 %v2194_v8 }
 0x28a   : > { %7030 = vmatpush3.xpose.msra.mxu1 %v2206_v5  ;;  %7031 = vmatprep.mubr.msk.f32.mxu1 %vm8272_vm0, %v8273_v1 }
 0x28b   : > { %7034 = vmatprep.subr.mxu1 %v8273_v1 }
 0x291   : > { %7032 = vmatmul.mubr.f32.vlgmr.msra.gmra.mrb[2].mxu1 %v2195_v10 }
 0x292   : > { %7035 = vmatpush3.xpose.msra.mxu1 %v2129_v4  ;;  %7036 = vmatprep.mubr.msk.f32.mxu1 %vm8272_vm0, %v8273_v1 }
 0x293   : > { %7039 = vmatprep.subr.mxu1 %v8273_v1 }
 0x299   : > { %7037 = vmatmul.mubr.f32.vlgmr.msra.gmra.mrb[2].mxu1 %v2196_v11 }
 0x29a   : > { %7040 = vmatpush3.xpose.msra.mxu1 %v2207_v9  ;;  %7041 = vmatprep.mubr.msk.f32.mxu1 %vm8272_vm0, %v8273_v1 }
 0x29b   : > { %7044 = vmatprep.subr.mxu1 %v8273_v1  ;;  %v2116_v21 = vpop.f32.mrb[2].mxu0 }
 0x29c   : > { %v9012_v27 = vadd.f32 %v6575_v16, %v2116_v21  ;;  %v7018_v18 = vpop.f32.mrb[3].mxu0 }
 0x29e   : > { %3479 = vrot.lane.b32.xlu0 %v9012_v27, %s8275_s15  ;;  %4385 = vrot.lane.b32.xlu1 %v9012_v27, %s8274_s23  ;;  %v9019_v19 = vand.u32 4294901760, %v9012_v27  ;;  %s8160_s23 = scalar_lea.vmem %s8159_s14, 256 }
 0x29f   : > { %p8162_p6 = scmp.lt.s32.totalorder %s8160_s23, %s8154_s21 }
 0x2a0   : > { %v2656_v63 = vsub.f32 %v9012_v27, %v9019_v19 }
 0x2a1   : > { %7042 = vmatmul.mubr.f32.vlgmr.msra.gmra.mrb[2].mxu1 %v2194_v8  ;;  %p8163_p7 = por %p8162_p6, %p8161_p0 }
 0x2a2   : > { %7045 = vmatpush3.xpose.msra.mxu1 %v2129_v4  ;;  %7046 = vmatprep.mubr.msk.f32.mxu1 %vm8272_vm0, %v8273_v1  ;;  %v2657_v6 = vand.u32 4294901760, %v2656_v63 }
 0x2a3   : > { %7049 = vmatprep.subr.mxu1 %v8273_v1  ;;  %5291 = vrot.lane.b32.xlu0 %v9012_v27, %s8276_s11  ;;  %p8164_p11 = pnand %p8163_p7, %p8157_p5 }
 0x2a4   : > { %v2658_v9 = vsub.f32 %v2656_v63, %v2657_v6 }
 0x2a6   : > { %v2659_v12 = vand.u32 4294901760, %v2658_v9 }
 0x2a9   : > { %7047 = vmatmul.mubr.f32.vlgmr.msra.gmra.mrb[2].mxu1 %v2194_v8 }
 0x2aa   : > { %7051 = vmatprep.mubr.msk.f32.mxu1 %vm8272_vm0, %v8273_v1  ;;  %7050 = vmatpush3.msra.mxu1 %v9019_v19 }
 0x2ab   : > { %7054 = vmatprep.subr.mxu1 %v8273_v1 }
 0x2e8   : > { %v3025_v20 = vpop.permute.xlu0 %3024  ;;  %v3932_v41 = vpop.permute.xlu1 %3931 }
 0x2e9   : > { %v3028_v23 = vsel %vm2121_vm3, %v3025_v20, 0  ;;  %v3935_v42 = vsel %vm2121_vm3, %v3932_v41, 0 }
 0x2ea   : > { %v3098_v28 = vand.u32 4294901760, %v3028_v23  ;;  %v4005_v44 = vand.u32 4294901760, %v3935_v42 }
 0x2ec   : > { %v3099_v29 = vsub.f32 %v3028_v23, %v3098_v28  ;;  %v3027_v31 = vpop.permute.xlu0 %3026  ;;  %v3934_v17 = vpop.permute.xlu1 %3933  ;;  %v4006_v45 = vsub.f32 %v3935_v42, %v4005_v44 }
 0x2ed   : > { %v3030_v25 = vsel %vm2121_vm3, %v3027_v31, 0  ;;  %v3937_v43 = vsel %vm2121_vm3, %v3934_v17, 0 }
 0x2ee   : > { %v3100_v26 = vand.u32 4294901760, %v3099_v29  ;;  %v3033_v32 = vand.u32 4294901760, %v3030_v25  ;;  %v3940_v22 = vand.u32 4294901760, %v3937_v43  ;;  %v4007_v47 = vand.u32 4294901760, %v4006_v45 }
 0x2f0   : > { %v3101_v33 = vsub.f32 %v3099_v29, %v3100_v26  ;;  %v3110_v35 = vsub.f32 %v3030_v25, %v3033_v32  ;;  %7080 = vmatpush3.xpose.msra.mxu0 %v3033_v32  ;;  %v4017_v46 = vsub.f32 %v3937_v43, %v3940_v22  ;;  %v4008_v48 = vsub.f32 %v4006_v45, %v4007_v47  ;;  %v4838_v34 = vpop.permute.xlu0 %4837  ;;  %v4840_v51 = vpop.permute.xlu1 %4839 }
 0x2f1   : > { %7084 = vmatprep.subr.mxu0 %v8273_v1  ;;  %v4841_v37 = vsel %vm2121_vm3, %v4838_v34, 0  ;;  %v4843_v52 = vsel %vm2121_vm3, %v4840_v51, 0 }
 0x2f2   : > { %v3102_v36 = vand.u32 4294901760, %v3101_v33  ;;  %v3111_v38 = vand.u32 4294901760, %v3110_v35  ;;  %v4018_v24 = vand.u32 4294901760, %v4017_v46  ;;  %v4009_v50 = vand.u32 4294901760, %v4008_v48 }
 0x2f3   : > { %v4911_v53 = vand.u32 4294901760, %v4841_v37  ;;  %v4846_v54 = vand.u32 4294901760, %v4843_v52 }
 0x2f4   : > { %v3112_v39 = vsub.f32 %v3110_v35, %v3111_v38  ;;  %7082 = vmatmul.mubr.f32.vlgmr.msra.gmra.mrb[4].mxu0 %v3102_v36  ;;  %v4019_v49 = vsub.f32 %v4017_v46, %v4018_v24 }
 0x2f5   : > { %7086 = vmatprep.mubr.msk.f32.mxu0 %vm8272_vm0, %v8273_v1  ;;  %v4912_v55 = vsub.f32 %v4841_v37, %v4911_v53  ;;  %v4923_v56 = vsub.f32 %v4843_v52, %v4846_v54 }
 0x2f6   : > { %v3113_v40 = vand.u32 4294901760, %v3112_v39  ;;  %v4020_v30 = vand.u32 4294901760, %v4019_v49 }
 0x2f7   : > { %v4913_v57 = vand.u32 4294901760, %v4912_v55  ;;  %v4924_v58 = vand.u32 4294901760, %v4923_v56 }
 0x2f8   : > { %7085 = vmatpush3.xpose.msra.mxu0 %v3113_v40 }
 0x2f9   : > { %7089 = vmatprep.subr.mxu0 %v8273_v1  ;;  %v4914_v59 = vsub.f32 %v4912_v55, %v4913_v57  ;;  %v4925_v60 = vsub.f32 %v4923_v56, %v4924_v58 }
 0x2fb   : > { %v4915_v61 = vand.u32 4294901760, %v4914_v59  ;;  %v4926_v62 = vand.u32 4294901760, %v4925_v60 }
 0x2fc   : > { %7087 = vmatmul.mubr.f32.vlgmr.msra.gmra.mrb[4].mxu0 %v3098_v28 }
 0x2fd   : > { %7090 = vmatpush3.xpose.msra.mxu0 %v3110_v35  ;;  %7091 = vmatprep.mubr.msk.f32.mxu0 %vm8272_vm0, %v8273_v1 }
 0x2fe   : > { %7094 = vmatprep.subr.mxu0 %v8273_v1 }
 0x304   : > { %7092 = vmatmul.mubr.f32.vlgmr.msra.gmra.mrb[4].mxu0 %v3099_v29 }
 0x305   : > { %7095 = vmatpush3.xpose.msra.mxu0 %v3033_v32  ;;  %7096 = vmatprep.mubr.msk.f32.mxu0 %vm8272_vm0, %v8273_v1 }
 0x306   : > { %7099 = vmatprep.subr.mxu0 %v8273_v1 }
 0x30c   : > { %7097 = vmatmul.mubr.f32.vlgmr.msra.gmra.mrb[4].mxu0 %v3100_v26 }
 0x30d   : > { %7100 = vmatpush3.xpose.msra.mxu0 %v3111_v38  ;;  %7101 = vmatprep.mubr.msk.f32.mxu0 %vm8272_vm0, %v8273_v1 }
 0x30e   : > { %7104 = vmatprep.subr.mxu0 %v8273_v1 }
 0x310   : > { %v3480_v13 = vpop.permute.xlu0 %3479  ;;  %v4386_v26 = vpop.permute.xlu1 %4385 }
 0x311   : > { %v3486_v14 = vand.u32 4294901760, %v3480_v13 }
 0x313   : > { %v3563_v15 = vsub.f32 %v3480_v13, %v3486_v14 }
 0x314   : > { %7102 = vmatmul.mubr.f32.vlgmr.msra.gmra.mrb[4].mxu0 %v3098_v28 }
 0x315   : > { %7105 = vmatpush3.xpose.msra.mxu0 %v3033_v32  ;;  %7106 = vmatprep.mubr.msk.f32.mxu0 %vm8272_vm0, %v8273_v1  ;;  %v4392_v32 = vand.u32 4294901760, %v4386_v26 }
 0x316   : > { %7139 = vmatprep.subr.mxu0 %v8273_v1 }
 0x317   : > { %v4469_v33 = vsub.f32 %v4386_v26, %v4392_v32 }
 0x319   : > { %v4470_v40 = vand.u32 4294901760, %v4469_v33 }
 0x31b   : > { %v4471_v42 = vsub.f32 %v4469_v33, %v4470_v40 }
 0x31c   : > { %7107 = vmatmul.mubr.f32.vlgmr.msra.gmra.mrb[4].mxu0 %v3098_v28 }
 0x31d   : > { %7140 = vmatpush3.xpose.msra.mxu0 %v3940_v22  ;;  %7141 = vmatprep.mubr.msk.f32.mxu0 %vm8272_vm0, %v8273_v1 }
 0x31e   : > { %7144 = vmatprep.subr.mxu0 %v8273_v1 }
 0x320   : > { %7142 = vmatmul.mubr.f32.vlgmr.msra.gmra.mrb[6].mxu0 %v4009_v50 }
 0x321   : > { %7145 = vmatpush3.xpose.msra.mxu0 %v4020_v30  ;;  %7146 = vmatprep.mubr.msk.f32.mxu0 %vm8272_vm0, %v8273_v1 }
 0x322   : > { %7149 = vmatprep.subr.mxu0 %v8273_v1 }
 0x328   : > { %7147 = vmatmul.mubr.f32.vlgmr.msra.gmra.mrb[6].mxu0 %v4005_v44 }
 0x329   : > { %7150 = vmatpush3.xpose.msra.mxu0 %v4017_v46  ;;  %7151 = vmatprep.mubr.msk.f32.mxu0 %vm8272_vm0, %v8273_v1 }
 0x32a   : > { %7154 = vmatprep.subr.mxu0 %v8273_v1 }
 0x330   : > { %7152 = vmatmul.mubr.f32.vlgmr.msra.gmra.mrb[6].mxu0 %v4006_v45  ;;  %v5292_v45 = vpop.permute.xlu0 %5291 }
 0x331   : > { %7155 = vmatpush3.xpose.msra.mxu0 %v3940_v22  ;;  %7156 = vmatprep.mubr.msk.f32.mxu0 %vm8272_vm0, %v8273_v1  ;;  %v5298_v46 = vand.u32 4294901760, %v5292_v45 }
 0x332   : > { %7159 = vmatprep.subr.mxu0 %v8273_v1 }
 0x338   : > { %7157 = vmatmul.mubr.f32.vlgmr.msra.gmra.mrb[6].mxu0 %v4007_v47  ;;  %v5375_v47 = vsub.f32 %v5292_v45, %v5298_v46 }
 0x339   : > { %7160 = vmatpush3.xpose.msra.mxu0 %v4018_v24  ;;  %7161 = vmatprep.mubr.msk.f32.mxu0 %vm8272_vm0, %v8273_v1 }
 0x33a   : > { %7164 = vmatprep.subr.mxu0 %v8273_v1  ;;  %v5376_v30 = vand.u32 4294901760, %v5375_v47 }
 0x33c   : > { %v5377_v37 = vsub.f32 %v5375_v47, %v5376_v30 }
 0x340   : > { %7162 = vmatmul.mubr.f32.vlgmr.msra.gmra.mrb[6].mxu0 %v4005_v44 }
 0x341   : > { %7165 = vmatpush3.xpose.msra.mxu0 %v3940_v22  ;;  %7166 = vmatprep.mubr.msk.f32.mxu0 %vm8272_vm0, %v8273_v1  ;;  %v4472_v22 = vand.u32 4294901760, %v4471_v42 }
 0x342   : > { %7199 = vmatprep.subr.mxu0 %v8273_v1 }
 0x348   : > { %7167 = vmatmul.mubr.f32.vlgmr.msra.gmra.mrb[6].mxu0 %v4005_v44 }
 0x349   : > { %7200 = vmatpush3.xpose.msra.mxu0 %v4846_v54  ;;  %7201 = vmatprep.mubr.msk.f32.mxu0 %vm8272_vm0, %v8273_v1 }
 0x34a   : > { %7204 = vmatprep.subr.mxu0 %v8273_v1 }
 0x34c   : > { %7202 = vmatmul.mubr.f32.vlgmr.msra.gmra.mrb[8].mxu0 %v4915_v61  ;;  %v5767_v61 = vld [vmem:[#allocation19] sm:$0xff] }
 0x34d   : > { %7205 = vmatpush3.xpose.msra.mxu0 %v4926_v62  ;;  %7206 = vmatprep.mubr.msk.f32.mxu0 %vm8272_vm0, %v8273_v1  ;;  %v5768_v62 = vld [vmem:[#allocation19 + $0x8] sm:$0xff] }
 0x34e   : > { %7209 = vmatprep.subr.mxu0 %v8273_v1 }
 0x354   : > { %7207 = vmatmul.mubr.f32.vlgmr.msra.gmra.mrb[8].mxu0 %v4911_v53 }
 0x355   : > { %7210 = vmatpush3.xpose.msra.mxu0 %v4923_v56  ;;  %7211 = vmatprep.mubr.msk.f32.mxu0 %vm8272_vm0, %v8273_v1 }
 0x356   : > { %7214 = vmatprep.subr.mxu0 %v8273_v1 }
 0x35c   : > { %7212 = vmatmul.mubr.f32.vlgmr.msra.gmra.mrb[8].mxu0 %v4912_v55 }
 0x35d   : > { %7215 = vmatpush3.xpose.msra.mxu0 %v4846_v54  ;;  %7216 = vmatprep.mubr.msk.f32.mxu0 %vm8272_vm0, %v8273_v1 }
 0x35e   : > { %7219 = vmatprep.subr.mxu0 %v8273_v1 }
 0x364   : > { %7217 = vmatmul.mubr.f32.vlgmr.msra.gmra.mrb[8].mxu0 %v4913_v57 }
 0x365   : > { %7220 = vmatpush3.xpose.msra.mxu0 %v4924_v58  ;;  %7221 = vmatprep.mubr.msk.f32.mxu0 %vm8272_vm0, %v8273_v1 }
 0x366   : > { %7224 = vmatprep.subr.mxu0 %v8273_v1 }
 0x36c   : > { %7222 = vmatmul.mubr.f32.vlgmr.msra.gmra.mrb[8].mxu0 %v4911_v53 }
 0x36d   : > { %7225 = vmatpush3.xpose.msra.mxu0 %v4846_v54  ;;  %7226 = vmatprep.mubr.msk.f32.mxu0 %vm8272_vm0, %v8273_v1  ;;  %v5378_v54 = vand.u32 4294901760, %v5377_v37 }
 0x36e   : > { %7517 = vmatprep.subr.bf16.mxu0 %v8271_v0 }
 0x374   : > { %7227 = vmatmul.mubr.f32.vlgmr.msra.gmra.mrb[8].mxu0 %v4911_v53 }
 0x375   : > { %7332 = vmatprep.mubr.msk.f32.mxu0 %vm8272_vm0, %v8273_v1 }
 0x37c   : > { %v2570_v2 = vpop.f32.mrb[2].mxu1 }
 0x37d   : > { %v2576_v3 = vsel %vm2574_vm4, %v2570_v2, 0  ;;  %v7048_v4 = vpop.f32.mrb[3].mxu1  ;;  %v5789_v2 = vand.u32 4294901760, %v5768_v62 }
 0x37e   : > { %v2644_v5 = vand.u32 4294901760, %v2576_v3  ;;  %v5769_v4 = vld [vmem:[#allocation19 + $0x10] sm:$0xff] }
 0x380   : > { %v2645_v7 = vsub.f32 %v2576_v3, %v2644_v5 }
 0x382   : > { %v2646_v8 = vand.u32 4294901760, %v2645_v7 }
 0x384   : > { %v2647_v10 = vsub.f32 %v2645_v7, %v2646_v8 }
 0x386   : > { %v2648_v11 = vand.u32 4294901760, %v2647_v10  ;;  %v5771_v10 = vld [vmem:[#allocation19 + $0x20] sm:$0xff] }
 0x387   : > { %v5798_v13 = vand.u32 4294901760, %v5771_v10 }
 0x388   : > { %7052 = vmatmul.mubr.f32.vlgmr.msra.gmra.mrb[4].mxu1 %v2648_v11  ;;  %v5772_v11 = vld [vmem:[#allocation19 + $0x28] sm:$0xff] }
 0x389   : > { %7055 = vmatpush3.msra.mxu1 %v2659_v12  ;;  %7056 = vmatprep.mubr.msk.f32.mxu1 %vm8272_vm0, %v8273_v1  ;;  %v5773_v12 = vld [vmem:[#allocation19 + $0x30] sm:$0xff] }
 0x38a   : > { %7059 = vmatprep.subr.mxu1 %v8273_v1 }
 0x390   : > { %7057 = vmatmul.mubr.f32.vlgmr.msra.gmra.mrb[4].mxu1 %v2644_v5 }
 0x391   : > { %7060 = vmatpush3.msra.mxu1 %v2656_v63  ;;  %7061 = vmatprep.mubr.msk.f32.mxu1 %vm8272_vm0, %v8273_v1  ;;  %v5786_v63 = vand.u32 4294901760, %v5767_v61 }
 0x392   : > { %7064 = vmatprep.subr.mxu1 %v8273_v1 }
 0x393   : > { %v9166_v3 = vpack.c.bf16 %v5789_v2, %v5786_v63 }
 0x395   : > { %7519 = vmatpush3.bf16.msra.mxu0 %v9166_v3 }
 0x396   : > { %7520 = vmatprep.subr.bf16.mxu0 %v8271_v0 }
 0x398   : > { %7062 = vmatmul.mubr.f32.vlgmr.msra.gmra.mrb[4].mxu1 %v2645_v7  ;;  %v9170_v7 = vsub.f32 %v5768_v62, %v5789_v2 }
 0x399   : > { %7065 = vmatpush3.msra.mxu1 %v9019_v19  ;;  %7066 = vmatprep.mubr.msk.f32.mxu1 %vm8272_vm0, %v8273_v1 }
 0x39a   : > { %7069 = vmatprep.subr.mxu1 %v8273_v1 }
 0x3a0   : > { %7067 = vmatmul.mubr.f32.vlgmr.msra.gmra.mrb[4].mxu1 %v2646_v8  ;;  %v5792_v8 = vand.u32 4294901760, %v5769_v4 }
 0x3a1   : > { %7070 = vmatpush3.msra.mxu1 %v2657_v6  ;;  %7071 = vmatprep.mubr.msk.f32.mxu1 %vm8272_vm0, %v8273_v1  ;;  %v9168_v6 = vsub.f32 %v5767_v61, %v5786_v63 }
 0x3a2   : > { %7074 = vmatprep.subr.mxu1 %v8273_v1 }
 0x3a3   : > { %v7506_v62 = vpack.c.bf16 %v9170_v7, %v9168_v6 }
 0x3a8   : > { %7072 = vmatmul.mubr.f32.vlgmr.msra.gmra.mrb[4].mxu1 %v2644_v5 }
 0x3a9   : > { %7075 = vmatpush3.msra.mxu1 %v9019_v19  ;;  %7076 = vmatprep.mubr.msk.f32.mxu1 %vm8272_vm0, %v8273_v1  ;;  %v3564_v19 = vand.u32 4294901760, %v3563_v15 }
 0x3aa   : > { %7109 = vmatprep.subr.mxu1 %v8273_v1 }
 0x3ab   : > { %v3565_v28 = vsub.f32 %v3563_v15, %v3564_v19 }
 0x3ad   : > { %v3566_v25 = vand.u32 4294901760, %v3565_v28 }
 0x3b0   : > { %7077 = vmatmul.mubr.f32.vlgmr.msra.gmra.mrb[4].mxu1 %v2644_v5  ;;  %v5770_v5 = vld [vmem:[#allocation19 + $0x18] sm:$0xff] }
 0x3b1   : > { %7110 = vmatpush3.msra.mxu1 %v3486_v14  ;;  %7111 = vmatprep.mubr.msk.f32.mxu1 %vm8272_vm0, %v8273_v1  ;;  %v5795_v9 = vand.u32 4294901760, %v5770_v5 }
 0x3b2   : > { %7114 = vmatprep.subr.mxu1 %v8273_v1 }
 0x3ef   : > { %v3474_v16 = vpop.f32.mrb[4].mxu0 }
 0x3f0   : > { %v3483_v21 = vsel %vm2574_vm4, %v3474_v16, 0  ;;  %v7108_v27 = vpop.f32.mrb[5].mxu0  ;;  %v5804_v16 = vand.u32 4294901760, %v5773_v12 }
 0x3f1   : > { %v3551_v18 = vand.u32 4294901760, %v3483_v21  ;;  %v9178_v27 = vsub.f32 %v5769_v4, %v5792_v8 }
 0x3f2   : > { %v9186_v28 = vsub.f32 %v5773_v12, %v5804_v16 }
 0x3f3   : > { %v3552_v20 = vsub.f32 %v3483_v21, %v3551_v18  ;;  %v9176_v21 = vpack.c.bf16 %v5795_v9, %v5792_v8 }
 0x3f5   : > { %v3553_v23 = vand.u32 4294901760, %v3552_v20  ;;  %7522 = vmatpush3.bf16.msra.mxu0 %v9176_v21 }
 0x3f6   : > { %7523 = vmatprep.subr.bf16.mxu0 %v8271_v0 }
 0x3f7   : > { %v3554_v29 = vsub.f32 %v3552_v20, %v3553_v23 }
 0x3f9   : > { %v3555_v31 = vand.u32 4294901760, %v3554_v29 }
 0x3fb   : > { %7112 = vmatmul.mubr.f32.vlgmr.msra.gmra.mrb[6].mxu1 %v3555_v31 }
 0x3fc   : > { %7115 = vmatpush3.msra.mxu1 %v3566_v25  ;;  %7116 = vmatprep.mubr.msk.f32.mxu1 %vm8272_vm0, %v8273_v1 }
 0x3fd   : > { %7119 = vmatprep.subr.mxu1 %v8273_v1 }
 0x403   : > { %7117 = vmatmul.mubr.f32.vlgmr.msra.gmra.mrb[6].mxu1 %v3551_v18 }
 0x404   : > { %7120 = vmatpush3.msra.mxu1 %v3563_v15  ;;  %7121 = vmatprep.mubr.msk.f32.mxu1 %vm8272_vm0, %v8273_v1  ;;  %v5774_v15 = vld [vmem:[#allocation19 + $0x38] sm:$0xff] }
 0x405   : > { %7124 = vmatprep.subr.mxu1 %v8273_v1 }
 0x40b   : > { %7122 = vmatmul.mubr.f32.vlgmr.msra.gmra.mrb[6].mxu1 %v3552_v20  ;;  %v9182_v20 = vsub.f32 %v5771_v10, %v5798_v13  ;;  %v5743_v10 = vld [vmem:[#allocation3] sm:$0xff] }
 0x40c   : > { %7125 = vmatpush3.msra.mxu1 %v3486_v14  ;;  %7126 = vmatprep.mubr.msk.f32.mxu1 %vm8272_vm0, %v8273_v1 }
 0x40d   : > { %7129 = vmatprep.subr.mxu1 %v8273_v1 }
 0x413   : > { %7127 = vmatmul.mubr.f32.vlgmr.msra.gmra.mrb[6].mxu1 %v3553_v23 }
 0x414   : > { %7130 = vmatpush3.msra.mxu1 %v3564_v19  ;;  %7131 = vmatprep.mubr.msk.f32.mxu1 %vm8272_vm0, %v8273_v1  ;;  %v5807_v19 = vand.u32 4294901760, %v5774_v15 }
 0x415   : > { %7134 = vmatprep.subr.mxu1 %v8273_v1 }
 0x416   : > { %v9192_v31 = vsub.f32 %v5774_v15, %v5807_v19  ;;  %v9198_v25 = vpack.c.bf16 %v5807_v19, %v5804_v16 }
 0x418   : > { %v7515_v4 = vpack.c.bf16 %v9192_v31, %v9186_v28 }
 0x41b   : > { %7132 = vmatmul.mubr.f32.vlgmr.msra.gmra.mrb[6].mxu1 %v3551_v18  ;;  %v4381_v35 = vpop.f32.mrb[6].mxu0 }
 0x41c   : > { %7135 = vmatpush3.msra.mxu1 %v3486_v14  ;;  %v4389_v36 = vsel %vm2574_vm4, %v4381_v35, 0  ;;  %v7168_v38 = vpop.f32.mrb[7].mxu0  ;;  %7136 = vmatprep.mubr.msk.f32.mxu1 %vm8272_vm0, %v8273_v1  ;;  %v5801_v14 = vand.u32 4294901760, %v5772_v11  ;;  %v5878_v35 = vand.u32 4294901760, %v9170_v7 }
 0x41d   : > { %v4457_v39 = vand.u32 4294901760, %v4389_v36  ;;  %7169 = vmatprep.subr.mxu1 %v8273_v1 }
 0x41e   : > { %v9184_v23 = vsub.f32 %v5772_v11, %v5801_v14  ;;  %v9190_v29 = vpack.c.bf16 %v5801_v14, %v5798_v13 }
 0x41f   : > { %v4458_v41 = vsub.f32 %v4389_v36, %v4457_v39 }
 0x420   : > { %7525 = vmatpush3.bf16.msra.mxu0 %v9190_v29  ;;  %v7512_v2 = vpack.c.bf16 %v9184_v23, %v9182_v20 }
 0x421   : > { %v4459_v17 = vand.u32 4294901760, %v4458_v41  ;;  %7526 = vmatprep.subr.bf16.mxu0 %v8271_v0 }
 0x423   : > { %v4460_v43 = vsub.f32 %v4458_v41, %v4459_v17  ;;  %7137 = vmatmul.mubr.f32.vlgmr.msra.gmra.mrb[6].mxu1 %v3551_v18  ;;  %v9180_v18 = vsub.f32 %v5770_v5, %v5795_v9 }
 0x424   : > { %7170 = vmatpush3.msra.mxu1 %v4392_v32  ;;  %7171 = vmatprep.mubr.msk.f32.mxu1 %vm8272_vm0, %v8273_v1 }
 0x425   : > { %v4461_v44 = vand.u32 4294901760, %v4460_v43  ;;  %7174 = vmatprep.subr.mxu1 %v8273_v1  ;;  %7528 = vmatpush3.bf16.msra.mxu0 %v9198_v25  ;;  %v5892_v42 = vand.u32 4294901760, %v9180_v18  ;;  %v7509_v63 = vpack.c.bf16 %v9180_v18, %v9178_v27 }
 0x426   : > { %7529 = vmatprep.subr.bf16.mxu0 %v8271_v0 }
 0x427   : > { %7172 = vmatmul.mubr.f32.vlgmr.msra.gmra.mrb[8].mxu1 %v4461_v44  ;;  %v5893_v45 = vsub.f32 %v9180_v18, %v5892_v42 }
 0x428   : > { %7175 = vmatpush3.msra.mxu1 %v4472_v22  ;;  %7176 = vmatprep.mubr.msk.f32.mxu1 %vm8272_vm0, %v8273_v1 }
 0x429   : > { %7179 = vmatprep.subr.mxu1 %v8273_v1 }
 0x42f   : > { %7177 = vmatmul.mubr.f32.vlgmr.msra.gmra.mrb[8].mxu1 %v4457_v39 }
 0x430   : > { %7180 = vmatpush3.msra.mxu1 %v4469_v33  ;;  %7181 = vmatprep.mubr.msk.f32.mxu1 %vm8272_vm0, %v8273_v1  ;;  %v5871_v33 = vand.u32 4294901760, %v9168_v6 }
 0x431   : > { %7184 = vmatprep.subr.mxu1 %v8273_v1 }
 0x432   : > { %v7530_v36 = vpack.c.bf16 %v5878_v35, %v5871_v33  ;;  %v5872_v38 = vsub.f32 %v9168_v6, %v5871_v33 }
 0x437   : > { %7182 = vmatmul.mubr.f32.vlgmr.msra.gmra.mrb[8].mxu1 %v4458_v41 }
 0x438   : > { %7185 = vmatpush3.msra.mxu1 %v4392_v32  ;;  %7186 = vmatprep.mubr.msk.f32.mxu1 %vm8272_vm0, %v8273_v1 }
 0x439   : > { %7189 = vmatprep.subr.mxu1 %v8273_v1 }
 0x43f   : > { %7187 = vmatmul.mubr.f32.vlgmr.msra.gmra.mrb[8].mxu1 %v4459_v17  ;;  %v5885_v17 = vand.u32 4294901760, %v9178_v27 }
 0x440   : > { %7190 = vmatpush3.msra.mxu1 %v4470_v40  ;;  %7191 = vmatprep.mubr.msk.f32.mxu1 %vm8272_vm0, %v8273_v1  ;;  %v5873_v40 = vand.u32 4294901760, %v5872_v38 }
 0x441   : > { %7194 = vmatprep.subr.mxu1 %v8273_v1  ;;  %v7533_v44 = vpack.c.bf16 %v5892_v42, %v5885_v17  ;;  %v5886_v22 = vsub.f32 %v9178_v27, %v5885_v17 }
 0x447   : > { %7192 = vmatmul.mubr.f32.vlgmr.msra.gmra.mrb[8].mxu1 %v4457_v39  ;;  %v5287_v24 = vpop.f32.mrb[8].mxu0 }
 0x448   : > { %7195 = vmatpush3.msra.mxu1 %v4392_v32  ;;  %v5295_v48 = vsel %vm2574_vm4, %v5287_v24, 0  ;;  %v7228_v49 = vpop.f32.mrb[9].mxu0  ;;  %7196 = vmatprep.mubr.msk.f32.mxu1 %vm8272_vm0, %v8273_v1  ;;  %v5899_v24 = vand.u32 4294901760, %v9182_v20 }
 0x449   : > { %v5363_v50 = vand.u32 4294901760, %v5295_v48  ;;  %7229 = vmatprep.subr.mxu1 %v8273_v1 }
 0x44b   : > { %v5364_v34 = vsub.f32 %v5295_v48, %v5363_v50  ;;  %v5906_v48 = vand.u32 4294901760, %v9184_v23 }
 0x44d   : > { %v5365_v51 = vand.u32 4294901760, %v5364_v34 }
 0x44f   : > { %v5366_v52 = vsub.f32 %v5364_v34, %v5365_v51  ;;  %7197 = vmatmul.mubr.f32.vlgmr.msra.gmra.mrb[8].mxu1 %v4457_v39  ;;  %v5879_v39 = vsub.f32 %v9170_v7, %v5878_v35 }
 0x450   : > { %7230 = vmatpush3.msra.mxu1 %v5298_v46  ;;  %7231 = vmatprep.mubr.msk.f32.mxu1 %vm8272_vm0, %v8273_v1 }
 0x451   : > { %v5367_v53 = vand.u32 4294901760, %v5366_v52  ;;  %7234 = vmatprep.subr.mxu1 %v8273_v1  ;;  %v5880_v41 = vand.u32 4294901760, %v5879_v39  ;;  %v5913_v52 = vand.u32 4294901760, %v9186_v28 }
 0x453   : > { %7232 = vmatmul.mubr.f32.vlgmr.msra.gmra.mrb[10].mxu1 %v5367_v53  ;;  %v7494_v43 = vpack.c.bf16 %v5880_v41, %v5873_v40  ;;  %v5920_v53 = vand.u32 4294901760, %v9192_v31 }
 0x454   : > { %7235 = vmatpush3.msra.mxu1 %v5378_v54  ;;  %7236 = vmatprep.mubr.msk.f32.mxu1 %vm8272_vm0, %v8273_v1 }
 0x455   : > { %7239 = vmatprep.subr.mxu1 %v8273_v1 }
 0x45b   : > { %7237 = vmatmul.mubr.f32.vlgmr.msra.gmra.mrb[10].mxu1 %v5363_v50 }
 0x45c   : > { %7240 = vmatpush3.msra.mxu1 %v5375_v47  ;;  %7241 = vmatprep.mubr.msk.f32.mxu1 %vm8272_vm0, %v8273_v1  ;;  %v5894_v47 = vand.u32 4294901760, %v5893_v45 }
 0x45d   : > { %7244 = vmatprep.subr.mxu1 %v8273_v1 }
 0x463   : > { %7242 = vmatmul.mubr.f32.vlgmr.msra.gmra.mrb[10].mxu1 %v5364_v34  ;;  %v5907_v34 = vsub.f32 %v9184_v23, %v5906_v48 }
 0x464   : > { %7245 = vmatpush3.msra.mxu1 %v5298_v46  ;;  %7246 = vmatprep.mubr.msk.f32.mxu1 %vm8272_vm0, %v8273_v1 }
 0x465   : > { %7249 = vmatprep.subr.mxu1 %v8273_v1  ;;  %v5908_v37 = vand.u32 4294901760, %v5907_v34 }
 0x46b   : > { %7247 = vmatmul.mubr.f32.vlgmr.msra.gmra.mrb[10].mxu1 %v5365_v51 }
 0x46c   : > { %7250 = vmatpush3.msra.mxu1 %v5376_v30  ;;  %7251 = vmatprep.mubr.msk.f32.mxu1 %vm8272_vm0, %v8273_v1  ;;  %v5900_v30 = vsub.f32 %v9182_v20, %v5899_v24 }
 0x46d   : > { %7254 = vmatprep.subr.mxu1 %v8273_v1 }
 0x46e   : > { %v5901_v51 = vand.u32 4294901760, %v5900_v30 }
 0x470   : > { %v7500_v54 = vpack.c.bf16 %v5908_v37, %v5901_v51 }
 0x473   : > { %7252 = vmatmul.mubr.f32.vlgmr.msra.gmra.mrb[10].mxu1 %v5363_v50 }
 0x474   : > { %7255 = vmatpush3.msra.mxu1 %v5298_v46  ;;  %7256 = vmatprep.mubr.msk.f32.mxu1 %vm8272_vm0, %v8273_v1  ;;  %v5887_v46 = vand.u32 4294901760, %v5886_v22 }
 0x475   : > { %7481 = vmatprep.subr.bf16.mxu1 %v8271_v0 }
 0x476   : > { %v7497_v49 = vpack.c.bf16 %v5894_v47, %v5887_v46 }
 0x47b   : > { %7257 = vmatmul.mubr.f32.vlgmr.msra.gmra.mrb[10].mxu1 %v5363_v50  ;;  %v7536_v50 = vpack.c.bf16 %v5906_v48, %v5899_v24 }
 0x47c   : > { %7275 = vmatprep.mubr.msk.f32.mxu1 %vm8272_vm0, %v8273_v1  ;;  %7483 = vmatpush3.bf16.msra.mxu1 %v9166_v3 }
 0x47d   : > { %7484 = vmatprep.subr.bf16.mxu1 %v8271_v0 }
 0x480   : > { %7486 = vmatpush3.bf16.msra.mxu1 %v9176_v21 }
 0x481   : > { %7487 = vmatprep.subr.bf16.mxu1 %v8271_v0 }
 0x483   : > { %v9164_v55 = vpop.f32.mrb[4].mxu1 }
 0x484   : > { %v7078_v56 = vpop.f32.mrb[5].mxu1  ;;  %7489 = vmatpush3.bf16.msra.mxu1 %v9190_v29 }
 0x485   : > { %7490 = vmatprep.subr.bf16.mxu1 %v8271_v0  ;;  %v7539_v56 = vpack.c.bf16 %v5920_v53, %v5913_v52 }
 0x488   : > { %7492 = vmatpush3.bf16.msra.mxu1 %v9198_v25 }
 0x489   : > { %7493 = vmatprep.subr.bf16.mxu1 %v8271_v0 }
 0x4f6   : > { %v3927_v57 = vpop.f32.mrb[6].mxu1 }
 0x4f7   : > { %5745 = vrot.lane.b32.xlu1 %v3927_v57, %s8277_s28  ;;  %v7138_v58 = vpop.f32.mrb[7].mxu1  ;;  %v5914_v57 = vsub.f32 %v9186_v28, %v5913_v52 }
 0x4f8   : > { %v5921_v58 = vsub.f32 %v9192_v31, %v5920_v53 }
 0x522   : > { %v4833_v59 = vpop.f32.mrb[8].mxu1 }
 0x523   : > { %5749 = vrot.lane.b32.xlu0 %v4833_v59, %s8278_s0  ;;  %v7198_v60 = vpop.f32.mrb[9].mxu1  ;;  %v5915_v59 = vand.u32 4294901760, %v5914_v57 }
 0x524   : > { %v5922_v60 = vand.u32 4294901760, %v5921_v58 }
 0x526   : > { %v7503_v61 = vpack.c.bf16 %v5922_v60, %v5915_v59 }
 0x54e   : > { %v5739_v26 = vpop.f32.mrb[10].mxu1 }
 0x54f   : > { %5753 = vrot.lane.b32.xlu1 %v5739_v26, %s8279_s26  ;;  %v7258_v32 = vpop.f32.mrb[11].mxu1 }
 0x569   : > { %v5746_v5 = vpop.permute.xlu1 %5745 }
 0x56a   : > { %v5756_v9 = vsel %vm2121_vm3, %v9164_v55, %v5746_v5 }
 0x595   : > { %v5750_v8 = vpop.permute.xlu0 %5749 }
 0x596   : > { %v5757_v11 = vsel %vm627_vm1, %v5756_v9, %v5750_v8 }
 0x5c1   : > { %v5754_v12 = vpop.permute.xlu1 %5753 }
 0x5c2   : > { %v5759_v6 = vsel %vm5758_vm5, %v5757_v11, %v5754_v12 }
 0x5c3   : > { %v5760_v7 = vadd.f32 %v5759_v6, %v5743_v10 }
 0x5c5   : > { %5762 = vst.msk [vmem:[#allocation3] sm:$0xff] %vm1116_vm2, %v5760_v7 }
 0x5cc   : > { %v5766_v13 = vld [vmem:[#allocation3] sm:$0xff] }
 0x5cd   : > { %v5783_v14 = vsel %vm1116_vm2, %v5766_v13, 0 }
 0x5ce   : > { %v5858_v15 = vand.u32 4294901760, %v5783_v14 }
 0x5d0   : > { %v5859_v16 = vsub.f32 %v5783_v14, %v5858_v15 }
 0x5d2   : > { %v5860_v27 = vand.u32 4294901760, %v5859_v16 }
 0x5d4   : > { %7333 = vmatmul.mubr.f32.vlgmr.msra.gmra.mrb[10].mxu0 %v5860_v27  ;;  %v5861_v18 = vsub.f32 %v5859_v16, %v5860_v27 }
 0x5d5   : > { %7531 = vmatpush3.bf16.msra.mxu0 %v7530_v36  ;;  %7351 = vmatprep.mubr.msk.f32.mxu0 %vm8272_vm0, %v8273_v1 }
 0x5d6   : > { %7532 = vmatprep.subr.bf16.mxu0 %v8271_v0  ;;  %v5862_v55 = vand.u32 4294901760, %v5861_v18 }
 0x5d8   : > { %7276 = vmatmul.mubr.f32.vlgmr.msra.gmra.mrb[12].mxu1 %v5862_v55 }
 0x5d9   : > { %7495 = vmatpush3.bf16.msra.mxu1 %v7494_v43  ;;  %7534 = vmatpush3.bf16.msra.mxu0 %v7533_v44 }
 0x5da   : > { %7496 = vmatprep.subr.bf16.mxu1 %v8271_v0  ;;  %7535 = vmatprep.subr.bf16.mxu0 %v8271_v0 }
 0x5db   : > { %7294 = vmatprep.mubr.msk.f32.mxu1 %vm8272_vm0, %v8273_v1 }
 0x5dd   : > { %7498 = vmatpush3.bf16.msra.mxu1 %v7497_v49  ;;  %7537 = vmatpush3.bf16.msra.mxu0 %v7536_v50 }
 0x5de   : > { %7499 = vmatprep.subr.bf16.mxu1 %v8271_v0  ;;  %7538 = vmatprep.subr.bf16.mxu0 %v8271_v0 }
 0x5e1   : > { %7501 = vmatpush3.bf16.msra.mxu1 %v7500_v54  ;;  %7540 = vmatpush3.bf16.msra.mxu0 %v7539_v56 }
 0x5e2   : > { %7502 = vmatprep.subr.bf16.mxu1 %v8271_v0  ;;  %7541 = vmatprep.subr.bf16.mxu0 %v8271_v0 }
 0x5e4   : > { %7352 = vmatmul.mubr.f32.vlgmr.msra.gmra.mrb[10].mxu0 %v5858_v15 }
 0x5e5   : > { %7504 = vmatpush3.bf16.msra.mxu1 %v7503_v61  ;;  %7543 = vmatpush3.bf16.msra.mxu0 %v9166_v3 }
 0x5e6   : > { %7505 = vmatprep.subr.bf16.mxu1 %v8271_v0  ;;  %7544 = vmatprep.subr.bf16.mxu0 %v8271_v0 }
 0x5e7   : > { %7370 = vmatprep.mubr.msk.f32.mxu0 %vm8272_vm0, %v8273_v1 }
 0x5e8   : > { %7295 = vmatmul.mubr.f32.vlgmr.msra.gmra.mrb[12].mxu1 %v5858_v15 }
 0x5e9   : > { %7507 = vmatpush3.bf16.msra.mxu1 %v7506_v62  ;;  %7546 = vmatpush3.bf16.msra.mxu0 %v9176_v21  ;;  %v6576_v21 = vld [vmem:[#allocation21] ss:$0 sm:$0xff] }
 0x5ea   : > { %7508 = vmatprep.subr.bf16.mxu1 %v8271_v0  ;;  %7547 = vmatprep.subr.bf16.mxu0 %v8271_v0 }
 0x5eb   : > { %7313 = vmatprep.mubr.msk.f32.mxu1 %vm8272_vm0, %v8273_v1 }
 0x5ed   : > { %7510 = vmatpush3.bf16.msra.mxu1 %v7509_v63  ;;  %7549 = vmatpush3.bf16.msra.mxu0 %v9190_v29 }
 0x5ee   : > { %7511 = vmatprep.subr.bf16.mxu1 %v8271_v0  ;;  %7550 = vmatprep.subr.bf16.mxu0 %v8271_v0 }
 0x5f1   : > { %7513 = vmatpush3.bf16.msra.mxu1 %v7512_v2  ;;  %7552 = vmatpush3.bf16.msra.mxu0 %v9198_v25 }
 0x5f2   : > { %7514 = vmatprep.subr.bf16.mxu1 %v8271_v0 }
 0x5f4   : > { %7371 = vmatmul.mubr.f32.vlgmr.msra.gmra.mrb[10].mxu0 %v5858_v15 }
 0x5f5   : > { %7516 = vmatpush3.bf16.msra.mxu1 %v7515_v4 }
 0x5f8   : > { %7314 = vmatmul.mubr.f32.vlgmr.msra.gmra.mrb[12].mxu1 %v5859_v16 }
 0x6c7   : > { %v6318_v3 = vpop.f32.mrb[10].mxu0 }
 0x6c8   : > { %v7372_v1 = vpop.f32.mrb[11].mxu0 }
 0x6cb   : > { %v6063_v19 = vpop.f32.mrb[12].mxu1 }
 0x6cc   : > { %v7556_v20 = vadd.f32 %v6576_v21, %v6063_v19  ;;  %v7315_v23 = vpop.f32.mrb[13].mxu1 }
 0x6ce   : > { %v7557_v28 = vadd.f32 %v7556_v20, %v6318_v3 }
 0x6d0   : > { %6322 = vst.msk [vmem:[%s610_s16] sm:$0xff] %vm627_vm1, %v7557_v28 }
 0x6d1   : > { %8167 = shalt.err (!%p8164_p11)
}
 0x6d2   : > { %s8168_s7 = scalar_lea.hbm %s9266_s29, 128  ;;  %s8172_s28 = scalar_lea.hbm %s9399_s5, 256 }
 0x6d3   : > { %p8169_p13 = scmp.ne.s32.totalorder %s9266_s29, %s8168_s7  ;;  %p8173_p8 = scmp.lt.u32.totalorder %s9266_s29, %s9399_s5 }
 0x6d4   : > { %p8174_p12 = scmp.lt.u32.totalorder %s8172_s28, %s8168_s7  ;;  %p8176_p10 = scmp.lt.u32.totalorder %s8168_s7, %s9266_s29 }
 0x6d5   : > { %p8170_p2 = pnand %p8169_p13, %p9400_p3 }
 0x6d6   : > { %p8175_p9 = por %p8174_p12, %p8173_p8 }
 0x6d7   : > { %p8171_p4 = pneg %p8170_p2 }
 0x6d8   : > { %p8177_p1 = por %p8176_p10, %p8175_p9 }
 0x6da   : > { %p8178_p5 = pnand %p8177_p1, %p8171_p4 }
 0x6dc   : > { %8181 = shalt.err (!%p8178_p5)
}
 0x6dd   : > { %7714 = dma.vmem_to_hbm [thread:$0]  (%p9400_p3), %s9268_s27, 128, %s9266_s29, %s6324_s25  }
 0x6de PF: > { %s9401_s24 = sld [smem:[#allocation32_spill]]  ;;  %s6350_s12 = sand.u32 1, %s8236_s17  }
 0x6df   : > { %p9402_p0 = scmp.ne.s32.totalorder %s9374_s30, 0  ;;  %s6351_s16 = scalar_lea.sflag [#allocation6], %s6350_s12 }
 0x6e4   : > { %p9403_p6 = scmp.ge.s32.totalorder %s9401_s24, 2 }
 0x6e6   : > { %p7752_p7 = pnand %p9403_p6, %p9402_p0 }
 0x6e8   : > { %8231 = dma.done.wait (!%p7752_p7), %s6351_s16, 128  }
 0x6e9   : > { %8233 = vsyncadd (!%p7752_p7), %s6351_s16, 4294967168  ;;  %s34_s22 = sadd.s32 1, %s9401_s24   ;;  %s9404_s20 = sld [smem:[#allocation35_spill]] }
 0x6ea   : > { %p31_p11 = scmp.ge.s32.totalorder %s34_s22, 4   ;;  %s9405_s3 = sld [smem:[#allocation31_spill]] }
 0x6eb   : > { %s9406_s21 = sld [smem:[#allocation34_spill]]  ;;  %s9407_s17 = smov %s8240_s18 }
 0x6ec   : > { %s9408_s18 = smov %s8244_s19  ;;  %33 = sbr.rel (!%p31_p11) target bundleno = 21 (0x15), region = 173 }
 0x6ef   : > { %s9409_s19 = smov %s9404_s20 }
 0x6f0   : > { %s9410_s20 = smov %s9405_s3 }
 0x6f3   :  { %6356 = vsyncpa [#allocation5], 1 }
 0x6f4   :  { %6358 = vsyncpa [#allocation5 + $0x1], 1 }
 0x6f5   :  { %6359 = vsyncpa [#allocation8], 1 }
 0x6f6   :  { %6361 = vsyncpa [#allocation8 + $0x1], 1 }
 0x6f7   :  { %6362 = vsyncpa [#allocation11], 1 }
 0x6f8   :  { %6363 = vsyncpa [#allocation14], 1 }
 0x6f9   :  { %6364 = vsyncpa [#allocation17], 1 }
 0x6fa   :  { %6365 = vsyncpa [#allocation20], 1 }
 0x6fb   :  { %6366 = vsyncpa [#allocation6], 1 }
 0x6fc   :  { %6368 = vsyncpa [#allocation6 + $0x1], 1 }

</bundles_post_ra>
